<compile_context>
chip_gen: v6e
topology: v6e:2x2x1
jax: 0.10.0
libtpu: 0.0.40
codegen_flags: <defaults>
</compile_context>

<pallas_src>
import functools

import jax
import jax.numpy as jnp
from jax.experimental import pallas as pl
from jax.experimental.pallas import tpu as pltpu

# ---------------- small config consistent with the module ----------------
NHID = 32            # args.nhid
HEADS = 2            # args.attention_heads
NUM_LAYERS = 2       # args.num_layers
NUM_TASKS = 3        # args.num_classes
NUM_ATOM_FEATS = 4   # atom-feature columns consumed by AtomEncoder
ATOM_VOCAB = 8       # vocab per atom feature (synthetic)
N_NODES = 16         # total nodes in the batch
N_GRAPHS = 2         # graphs in the batch
DROPOUT = 0.5        # inference -> identity
OUT_PAD = 128        # lane-dense padded output width (sliced to NUM_TASKS outside)

VMEM_SPEC = pl.BlockSpec(memory_space=pltpu.MemorySpace.VMEM)


# ------------------------- fully fused Pallas kernel ----------------------
def _fused_net_kernel(
    x_atom_ref,    # [N, F]            int32 atom-feature indices
    batch_ref,     # [1, N]            int32 graph id per node
    atom_emb_ref,  # [F*V, NHID]       bf16  concatenated AtomEncoder tables
    lw_ref,        # [L, NHID, NHID]   bf16  GAS-layer weights (stacked)
    lb_ref,        # [L, 1, NHID]      f32   GAS-layer biases  (stacked)
    w1b_ref,       # [HEADS*3, NHID, NHID] bf16  classifier w1 pre-split per readout part
    b1_ref,        # [1, NHID]         f32
    w2_ref,        # [NHID, NHID//2]   bf16
    b2_ref,        # [1, NHID//2]      f32
    w3_ref,        # [NHID//2, OUT_PAD] bf16 (zero-padded)
    b3_ref,        # [1, OUT_PAD]      f32  (zero-padded)
    o_ref,         # [G, OUT_PAD]      f32
    *, n_graphs, heads, num_layers, num_feats, vocab,
):
    n = x_atom_ref.shape[0]
    nhid = atom_emb_ref.shape[1]

    # ---- AtomEncoder: ONE fused [N, F*V] multi-hot -> ONE MXU matmul ----------
    xi = x_atom_ref[...]                                              # [N, F] int32
    lane_iota = jax.lax.broadcasted_iota(jnp.int32, (n, num_feats * vocab), 1)
    oh = jnp.zeros((n, num_feats * vocab), jnp.float32)
    for k in range(num_feats):                                        # 4 VPU compares, no extra MXU
        oh = oh + (lane_iota == (xi[:, k:k + 1] + k * vocab)).astype(jnp.float32)
    x = jnp.dot(oh.astype(jnp.bfloat16), atom_emb_ref[...],
                preferred_element_type=jnp.float32)                   # [N, H] f32

    # ---- segment bookkeeping, built ONCE (hoisted out of heads x layers) -----
    g_iota = jax.lax.broadcasted_iota(jnp.int32, (n_graphs, n), 0)    # [G, N]
    mask_b = g_iota == batch_ref[...]                                 # [G, N] bool
    mask_bf = mask_b.astype(jnp.bfloat16)                             # MXU operand (segment sum)
    cnt = jnp.sum(mask_b.astype(jnp.float32), axis=1, keepdims=True)  # [G, 1]
    inv_cnt = 1.0 / cnt                                               # exact mean (matches reference)
    # NOTE: -1e30 sentinel would leak for a zero-node graph (not possible here).
    neg_bias = jnp.where(mask_b, 0.0, -1e30)[:, :, None]              # [G, N, 1] f32

    # ---- heads x layers: linear + ReLU; readouts accumulated straight into the
    # ---- first classifier layer via pre-split w1 blocks (no concatenates) ----
    h1 = jnp.zeros((n_graphs, nhid), jnp.float32)
    for head in range(heads):                                         # static, tiny
        for li in range(num_layers):                                  # static, tiny
            # TODO(synk): GAS layer source (attention top-k pooling + edge_index
            # message passing) was not provided; only its node transform + ReLU
            # hot path is implemented, batch/edge_index treated as unchanged.
            x = jnp.maximum(
                jnp.dot(x.astype(jnp.bfloat16), lw_ref[li],
                        preferred_element_type=jnp.float32) + lb_ref[li], 0.0)
            x_bf = x.astype(jnp.bfloat16)

            # readout(x, batch) = (segment_sum, segment_mean, segment_max)
            s = jnp.dot(mask_bf, x_bf, preferred_element_type=jnp.float32)   # [G, H]
            mean = s * inv_cnt                                               # [G, H]
            mx = jnp.max(x[None, :, :] + neg_bias, axis=1)                   # [G, H]

            base = 3 * head
            h1 = (h1
                  + jnp.dot(s.astype(jnp.bfloat16), w1b_ref[base + 0],
                            preferred_element_type=jnp.float32)
                  + jnp.dot(mean.astype(jnp.bfloat16), w1b_ref[base + 1],
                            preferred_element_type=jnp.float32)
                  + jnp.dot(mx.astype(jnp.bfloat16), w1b_ref[base + 2],
                            preferred_element_type=jnp.float32))

    # ---- classifier: Linear->ReLU->(Dropout=id)->Linear->ReLU->(Dropout=id)->Linear
    h1 = jnp.maximum(h1 + b1_ref[...], 0.0)
    h2 = jnp.maximum(
        jnp.dot(h1.astype(jnp.bfloat16), w2_ref[...],
                preferred_element_type=jnp.float32) + b2_ref[...], 0.0)
    o_ref[...] = (jnp.dot(h2.astype(jnp.bfloat16), w3_ref[...],
                          preferred_element_type=jnp.float32) + b3_ref[...])


# ----------------------------- forward ------------------------------------
@jax.jit
def net_forward(kparams, x_atom, batch):
    kernel = functools.partial(
        _fused_net_kernel,
        n_graphs=N_GRAPHS, heads=HEADS, num_layers=NUM_LAYERS,
        num_feats=NUM_ATOM_FEATS, vocab=ATOM_VOCAB,
    )
    out_pad = pl.pallas_call(
        kernel,
        in_specs=[VMEM_SPEC] * 11,
        out_specs=VMEM_SPEC,
        out_shape=jax.ShapeDtypeStruct((N_GRAPHS, OUT_PAD), jnp.float32),
    )(
        x_atom.astype(jnp.int32),
        batch.reshape(1, -1).astype(jnp.int32),
        kparams["atom_emb"], kparams["lw"], kparams["lb"],
        kparams["w1b"], kparams["b1"],
        kparams["w2"], kparams["b2"],
        kparams["w3p"], kparams["b3p"],
    )
    return out_pad[:, :NUM_TASKS]


# ----------------- one-time weight prep (stack / split / cast) -------------
def pack_params(params):
    w1b = params["w1"].reshape(HEADS * 3, NHID, NHID)          # (head, sum/mean/max) blocks
    w3p = jnp.zeros((NHID // 2, OUT_PAD), jnp.float32).at[:, :NUM_TASKS].set(params["w3"])
    b3p = jnp.zeros((1, OUT_PAD), jnp.float32).at[:, :NUM_TASKS].set(params["b3"])
    return {
        "atom_emb": params["atom_emb"].astype(jnp.bfloat16),
        "lw": jnp.stack([w for w, _ in params["layers"]]).astype(jnp.bfloat16),
        "lb": jnp.stack([b for _, b in params["layers"]]).astype(jnp.float32),
        "w1b": w1b.astype(jnp.bfloat16),
        "b1": params["b1"].astype(jnp.float32),
        "w2": params["w2"].astype(jnp.bfloat16),
        "b2": params["b2"].astype(jnp.float32),
        "w3p": w3p.astype(jnp.bfloat16),
        "b3p": b3p,
    }


# ---------------- pure-JAX f32 reference for a correctness check -----------
def ref_forward(params, x_atom, batch):
    onehot = jnp.concatenate(
        [jax.nn.one_hot(x_atom[:, k], ATOM_VOCAB, dtype=jnp.float32)
         for k in range(NUM_ATOM_FEATS)], axis=-1)
    x = onehot @ params["atom_emb"]
    mask = jnp.transpose(jax.nn.one_hot(batch, N_GRAPHS, dtype=jnp.float32))
    cnt = mask.sum(1, keepdims=True)
    xh = []
    for _ in range(HEADS):
        xs = jnp.zeros((N_GRAPHS, 3 * NHID), jnp.float32)
        for li in range(NUM_LAYERS):
            w, b = params["layers"][li]
            x = jnp.maximum(x @ w + b, 0.0)
            s = mask @ x
            mean = s / cnt
            mx = jnp.stack([jnp.max(jnp.where(mask[gi][:, None] > 0.5, x, -1e30), axis=0)
                            for gi in range(N_GRAPHS)])
            xs = xs + jnp.concatenate([s, mean, mx], -1)
        xh.append(xs)
    h = jnp.concatenate(xh, -1)
    h = jnp.maximum(h @ params["w1"] + params["b1"], 0.0)
    h = jnp.maximum(h @ params["w2"] + params["b2"], 0.0)
    return h @ params["w3"] + params["b3"]


# -------------------------- deterministic params ---------------------------
def init_params(key):
    ks = jax.random.split(key, 2 + NUM_LAYERS)
    scale = 0.1
    params = {"atom_emb": scale * jax.random.normal(
        ks[0], (NUM_ATOM_FEATS * ATOM_VOCAB, NHID), jnp.float32)}
    layers = []
    for i in range(NUM_LAYERS):
        kw, kb = jax.random.split(ks[1 + i])
        layers.append((scale * jax.random.normal(kw, (NHID, NHID), jnp.float32),
                       scale * jax.random.normal(kb, (1, NHID), jnp.float32)))
    params["layers"] = layers
    kc = jax.random.split(ks[-1], 6)
    params["w1"] = scale * jax.random.normal(kc[0], (HEADS * 3 * NHID, NHID), jnp.float32)
    params["b1"] = scale * jax.random.normal(kc[1], (1, NHID), jnp.float32)
    params["w2"] = scale * jax.random.normal(kc[2], (NHID, NHID // 2), jnp.float32)
    params["b2"] = scale * jax.random.normal(kc[3], (1, NHID // 2), jnp.float32)
    params["w3"] = scale * jax.random.normal(kc[4], (NHID // 2, NUM_TASKS), jnp.float32)
    params["b3"] = scale * jax.random.normal(kc[5], (1, NUM_TASKS), jnp.float32)
    return params


if __name__ == "__main__":
    import numpy as np

    key = jax.random.PRNGKey(0)
    kp, kx = jax.random.split(key)
    params = init_params(kp)
    kparams = pack_params(params)            # stack / split / cast ONCE, not per call

    x_atom = jax.random.randint(kx, (N_NODES, NUM_ATOM_FEATS), 0, ATOM_VOCAB, dtype=jnp.int32)
    batch = jnp.repeat(jnp.arange(N_GRAPHS, dtype=jnp.int32), N_NODES // N_GRAPHS)
    # edge_index carried for signature parity only (see TODO in the kernel)
    edge_index = jnp.zeros((2, N_NODES), jnp.int32)

    out = jax.block_until_ready(net_forward(kparams, x_atom, batch))
    ref = ref_forward(params, x_atom, batch)

    assert out.shape == (N_GRAPHS, NUM_TASKS)
    np.testing.assert_allclose(np.asarray(out), np.asarray(ref), rtol=5e-2, atol=5e-2)
    print("KERNEL_OK")
</pallas_src>

<mosaic_0001>
module attributes {stable_mosaic.version = 11 : i64} {
  func.func @_fused_net_kernel(%arg0: memref<16x4xi32, #tpu.memory_space<vmem>>, %arg1: memref<1x16xi32, #tpu.memory_space<vmem>>, %arg2: memref<32x32xbf16, #tpu.memory_space<vmem>>, %arg3: memref<2x32x32xbf16, #tpu.memory_space<vmem>>, %arg4: memref<2x1x32xf32, #tpu.memory_space<vmem>>, %arg5: memref<6x32x32xbf16, #tpu.memory_space<vmem>>, %arg6: memref<1x32xf32, #tpu.memory_space<vmem>>, %arg7: memref<32x16xbf16, #tpu.memory_space<vmem>>, %arg8: memref<1x16xf32, #tpu.memory_space<vmem>>, %arg9: memref<16x128xbf16, #tpu.memory_space<vmem>>, %arg10: memref<1x128xf32, #tpu.memory_space<vmem>>, %arg11: memref<2x128xf32, #tpu.memory_space<vmem>>) attributes {dimension_semantics = [], scalar_prefetch = 0 : i64, scratch_operands = 0 : i64, tpu.core_type = #tpu.core_type<tc>} {
    %c0 = arith.constant 0 : index
    %c0_0 = arith.constant 0 : index
    %0 = vector.load %arg0[%c0, %c0_0] : memref<16x4xi32, #tpu.memory_space<vmem>>, vector<16x4xi32>
    %1 = tpu.iota {dimensions = array<i32: 1>} : vector<16x32xi32>
    %cst = arith.constant 0.000000e+00 : f32
    %2 = vector.broadcast %cst : f32 to vector<16x32xf32>
    %3 = vector.extract_strided_slice %0 {offsets = [0, 0], sizes = [16, 1], strides = [1, 1]} : vector<16x4xi32> to vector<16x1xi32>
    %c0_i32 = arith.constant 0 : i32
    %4 = vector.broadcast %c0_i32 : i32 to vector<16x1xi32>
    %5 = arith.addi %3, %4 : vector<16x1xi32>
    %6 = vector.broadcast %5 : vector<16x1xi32> to vector<16x32xi32>
    %7 = arith.cmpi eq, %1, %6 : vector<16x32xi32>
    %8 = arith.extui %7 : vector<16x32xi1> to vector<16x32xi32>
    %9 = arith.sitofp %8 : vector<16x32xi32> to vector<16x32xf32>
    %10 = arith.addf %2, %9 : vector<16x32xf32>
    %11 = vector.extract_strided_slice %0 {offsets = [0, 1], sizes = [16, 1], strides = [1, 1]} : vector<16x4xi32> to vector<16x1xi32>
    %c8_i32 = arith.constant 8 : i32
    %12 = vector.broadcast %c8_i32 : i32 to vector<16x1xi32>
    %13 = arith.addi %11, %12 : vector<16x1xi32>
    %14 = vector.broadcast %13 : vector<16x1xi32> to vector<16x32xi32>
    %15 = arith.cmpi eq, %1, %14 : vector<16x32xi32>
    %16 = arith.extui %15 : vector<16x32xi1> to vector<16x32xi32>
    %17 = arith.sitofp %16 : vector<16x32xi32> to vector<16x32xf32>
    %18 = arith.addf %10, %17 : vector<16x32xf32>
    %19 = vector.extract_strided_slice %0 {offsets = [0, 2], sizes = [16, 1], strides = [1, 1]} : vector<16x4xi32> to vector<16x1xi32>
    %c16_i32 = arith.constant 16 : i32
    %20 = vector.broadcast %c16_i32 : i32 to vector<16x1xi32>
    %21 = arith.addi %19, %20 : vector<16x1xi32>
    %22 = vector.broadcast %21 : vector<16x1xi32> to vector<16x32xi32>
    %23 = arith.cmpi eq, %1, %22 : vector<16x32xi32>
    %24 = arith.extui %23 : vector<16x32xi1> to vector<16x32xi32>
    %25 = arith.sitofp %24 : vector<16x32xi32> to vector<16x32xf32>
    %26 = arith.addf %18, %25 : vector<16x32xf32>
    %27 = vector.extract_strided_slice %0 {offsets = [0, 3], sizes = [16, 1], strides = [1, 1]} : vector<16x4xi32> to vector<16x1xi32>
    %c24_i32 = arith.constant 24 : i32
    %28 = vector.broadcast %c24_i32 : i32 to vector<16x1xi32>
    %29 = arith.addi %27, %28 : vector<16x1xi32>
    %30 = vector.broadcast %29 : vector<16x1xi32> to vector<16x32xi32>
    %31 = arith.cmpi eq, %1, %30 : vector<16x32xi32>
    %32 = arith.extui %31 : vector<16x32xi1> to vector<16x32xi32>
    %33 = arith.sitofp %32 : vector<16x32xi32> to vector<16x32xf32>
    %34 = arith.addf %26, %33 : vector<16x32xf32>
    %35 = arith.truncf %34 : vector<16x32xf32> to vector<16x32xbf16>
    %c0_1 = arith.constant 0 : index
    %c0_2 = arith.constant 0 : index
    %36 = vector.load %arg2[%c0_1, %c0_2] : memref<32x32xbf16, #tpu.memory_space<vmem>>, vector<32x32xbf16>
    %cst_3 = arith.constant dense<0.000000e+00> : vector<16x32xf32>
    %37 = tpu.matmul %35, %36, %cst_3 {dimension_numbers = #tpu.dot_dimension_numbers<[1], [0], [0], [1], [0, 0, 1, 1], [], []>} : vector<16x32xbf16>, vector<32x32xbf16>, vector<16x32xf32> -> vector<16x32xf32>
    %38 = tpu.iota {dimensions = array<i32: 0>} : vector<2x16xi32>
    %c0_4 = arith.constant 0 : index
    %c0_5 = arith.constant 0 : index
    %39 = vector.load %arg1[%c0_4, %c0_5] : memref<1x16xi32, #tpu.memory_space<vmem>>, vector<1x16xi32>
    %40 = vector.broadcast %39 : vector<1x16xi32> to vector<2x16xi32>
    %41 = arith.cmpi eq, %38, %40 : vector<2x16xi32>
    %42 = arith.extui %41 : vector<2x16xi1> to vector<2x16xi32>
    %43 = arith.sitofp %42 : vector<2x16xi32> to vector<2x16xf32>
    %44 = arith.truncf %43 : vector<2x16xf32> to vector<2x16xbf16>
    %45 = arith.extui %41 : vector<2x16xi1> to vector<2x16xi32>
    %46 = arith.sitofp %45 : vector<2x16xi32> to vector<2x16xf32>
    %cst_6 = arith.constant dense<0.000000e+00> : vector<2xf32>
    %47 = vector.multi_reduction <add>, %46, %cst_6 [1] : vector<2x16xf32> to vector<2xf32>
    %48 = vector.shape_cast %47 : vector<2xf32> to vector<2x1xf32>
    %cst_7 = arith.constant 1.000000e+00 : f32
    %49 = vector.broadcast %cst_7 : f32 to vector<2x1xf32>
    %50 = arith.divf %49, %48 : vector<2x1xf32>
    %cst_8 = arith.constant 0.000000e+00 : f32
    %cst_9 = arith.constant -1.000000e+30 : f32
    %51 = vector.broadcast %cst_8 : f32 to vector<2x16xf32>
    %52 = vector.broadcast %cst_9 : f32 to vector<2x16xf32>
    %53 = arith.select %41, %51, %52 : vector<2x16xi1>, vector<2x16xf32>
    %54 = vector.shape_cast %53 : vector<2x16xf32> to vector<2x16x1xf32>
    %cst_10 = arith.constant 0.000000e+00 : f32
    %55 = vector.broadcast %cst_10 : f32 to vector<2x32xf32>
    %56 = arith.truncf %37 : vector<16x32xf32> to vector<16x32xbf16>
    %c0_11 = arith.constant 0 : index
    %c0_12 = arith.constant 0 : index
    %c0_13 = arith.constant 0 : index
    %57 = vector.load %arg3[%c0_11, %c0_12, %c0_13] : memref<2x32x32xbf16, #tpu.memory_space<vmem>>, vector<1x32x32xbf16>
    %58 = vector.shape_cast %57 : vector<1x32x32xbf16> to vector<32x32xbf16>
    %cst_14 = arith.constant dense<0.000000e+00> : vector<16x32xf32>
    %59 = tpu.matmul %56, %58, %cst_14 {dimension_numbers = #tpu.dot_dimension_numbers<[1], [0], [0], [1], [0, 0, 1, 1], [], []>} : vector<16x32xbf16>, vector<32x32xbf16>, vector<16x32xf32> -> vector<16x32xf32>
    %c0_15 = arith.constant 0 : index
    %c0_16 = arith.constant 0 : index
    %c0_17 = arith.constant 0 : index
    %60 = vector.load %arg4[%c0_15, %c0_16, %c0_17] : memref<2x1x32xf32, #tpu.memory_space<vmem>>, vector<1x1x32xf32>
    %61 = vector.shape_cast %60 : vector<1x1x32xf32> to vector<1x32xf32>
    %62 = vector.broadcast %61 : vector<1x32xf32> to vector<16x32xf32>
    %63 = arith.addf %59, %62 : vector<16x32xf32>
    %cst_18 = arith.constant 0.000000e+00 : f32
    %64 = vector.broadcast %cst_18 : f32 to vector<16x32xf32>
    %65 = arith.maximumf %63, %64 : vector<16x32xf32>
    %66 = arith.truncf %65 : vector<16x32xf32> to vector<16x32xbf16>
    %cst_19 = arith.constant dense<0.000000e+00> : vector<2x32xf32>
    %67 = tpu.matmul %44, %66, %cst_19 {dimension_numbers = #tpu.dot_dimension_numbers<[1], [0], [0], [1], [0, 0, 1, 1], [], []>} : vector<2x16xbf16>, vector<16x32xbf16>, vector<2x32xf32> -> vector<2x32xf32>
    %68 = vector.broadcast %50 : vector<2x1xf32> to vector<2x32xf32>
    %69 = arith.mulf %67, %68 : vector<2x32xf32>
    %70 = vector.shape_cast %65 : vector<16x32xf32> to vector<1x16x32xf32>
    %71 = vector.broadcast %70 : vector<1x16x32xf32> to vector<2x16x32xf32>
    %72 = vector.broadcast %54 : vector<2x16x1xf32> to vector<2x16x32xf32>
    %73 = arith.addf %71, %72 : vector<2x16x32xf32>
    %cst_20 = arith.constant dense<0xFF800000> : vector<2x32xf32>
    %74 = vector.multi_reduction <maximumf>, %73, %cst_20 [1] : vector<2x16x32xf32> to vector<2x32xf32>
    %75 = arith.truncf %67 : vector<2x32xf32> to vector<2x32xbf16>
    %c0_21 = arith.constant 0 : index
    %c0_22 = arith.constant 0 : index
    %c0_23 = arith.constant 0 : index
    %76 = vector.load %arg5[%c0_21, %c0_22, %c0_23] : memref<6x32x32xbf16, #tpu.memory_space<vmem>>, vector<1x32x32xbf16>
    %77 = vector.shape_cast %76 : vector<1x32x32xbf16> to vector<32x32xbf16>
    %cst_24 = arith.constant dense<0.000000e+00> : vector<2x32xf32>
    %78 = tpu.matmul %75, %77, %cst_24 {dimension_numbers = #tpu.dot_dimension_numbers<[1], [0], [0], [1], [0, 0, 1, 1], [], []>} : vector<2x32xbf16>, vector<32x32xbf16>, vector<2x32xf32> -> vector<2x32xf32>
    %79 = arith.addf %55, %78 : vector<2x32xf32>
    %80 = arith.truncf %69 : vector<2x32xf32> to vector<2x32xbf16>
    %c1 = arith.constant 1 : index
    %c0_25 = arith.constant 0 : index
    %c0_26 = arith.constant 0 : index
    %81 = vector.load %arg5[%c1, %c0_25, %c0_26] : memref<6x32x32xbf16, #tpu.memory_space<vmem>>, vector<1x32x32xbf16>
    %82 = vector.shape_cast %81 : vector<1x32x32xbf16> to vector<32x32xbf16>
    %cst_27 = arith.constant dense<0.000000e+00> : vector<2x32xf32>
    %83 = tpu.matmul %80, %82, %cst_27 {dimension_numbers = #tpu.dot_dimension_numbers<[1], [0], [0], [1], [0, 0, 1, 1], [], []>} : vector<2x32xbf16>, vector<32x32xbf16>, vector<2x32xf32> -> vector<2x32xf32>
    %84 = arith.addf %79, %83 : vector<2x32xf32>
    %85 = arith.truncf %74 : vector<2x32xf32> to vector<2x32xbf16>
    %c2 = arith.constant 2 : index
    %c0_28 = arith.constant 0 : index
    %c0_29 = arith.constant 0 : index
    %86 = vector.load %arg5[%c2, %c0_28, %c0_29] : memref<6x32x32xbf16, #tpu.memory_space<vmem>>, vector<1x32x32xbf16>
    %87 = vector.shape_cast %86 : vector<1x32x32xbf16> to vector<32x32xbf16>
    %cst_30 = arith.constant dense<0.000000e+00> : vector<2x32xf32>
    %88 = tpu.matmul %85, %87, %cst_30 {dimension_numbers = #tpu.dot_dimension_numbers<[1], [0], [0], [1], [0, 0, 1, 1], [], []>} : vector<2x32xbf16>, vector<32x32xbf16>, vector<2x32xf32> -> vector<2x32xf32>
    %89 = arith.addf %84, %88 : vector<2x32xf32>
    %90 = arith.truncf %65 : vector<16x32xf32> to vector<16x32xbf16>
    %c1_31 = arith.constant 1 : index
    %c0_32 = arith.constant 0 : index
    %c0_33 = arith.constant 0 : index
    %91 = vector.load %arg3[%c1_31, %c0_32, %c0_33] : memref<2x32x32xbf16, #tpu.memory_space<vmem>>, vector<1x32x32xbf16>
    %92 = vector.shape_cast %91 : vector<1x32x32xbf16> to vector<32x32xbf16>
    %cst_34 = arith.constant dense<0.000000e+00> : vector<16x32xf32>
    %93 = tpu.matmul %90, %92, %cst_34 {dimension_numbers = #tpu.dot_dimension_numbers<[1], [0], [0], [1], [0, 0, 1, 1], [], []>} : vector<16x32xbf16>, vector<32x32xbf16>, vector<16x32xf32> -> vector<16x32xf32>
    %c1_35 = arith.constant 1 : index
    %c0_36 = arith.constant 0 : index
    %c0_37 = arith.constant 0 : index
    %94 = vector.load %arg4[%c1_35, %c0_36, %c0_37] : memref<2x1x32xf32, #tpu.memory_space<vmem>>, vector<1x1x32xf32>
    %95 = vector.shape_cast %94 : vector<1x1x32xf32> to vector<1x32xf32>
    %96 = vector.broadcast %95 : vector<1x32xf32> to vector<16x32xf32>
    %97 = arith.addf %93, %96 : vector<16x32xf32>
    %cst_38 = arith.constant 0.000000e+00 : f32
    %98 = vector.broadcast %cst_38 : f32 to vector<16x32xf32>
    %99 = arith.maximumf %97, %98 : vector<16x32xf32>
    %100 = arith.truncf %99 : vector<16x32xf32> to vector<16x32xbf16>
    %cst_39 = arith.constant dense<0.000000e+00> : vector<2x32xf32>
    %101 = tpu.matmul %44, %100, %cst_39 {dimension_numbers = #tpu.dot_dimension_numbers<[1], [0], [0], [1], [0, 0, 1, 1], [], []>} : vector<2x16xbf16>, vector<16x32xbf16>, vector<2x32xf32> -> vector<2x32xf32>
    %102 = vector.broadcast %50 : vector<2x1xf32> to vector<2x32xf32>
    %103 = arith.mulf %101, %102 : vector<2x32xf32>
    %104 = vector.shape_cast %99 : vector<16x32xf32> to vector<1x16x32xf32>
    %105 = vector.broadcast %104 : vector<1x16x32xf32> to vector<2x16x32xf32>
    %106 = vector.broadcast %54 : vector<2x16x1xf32> to vector<2x16x32xf32>
    %107 = arith.addf %105, %106 : vector<2x16x32xf32>
    %cst_40 = arith.constant dense<0xFF800000> : vector<2x32xf32>
    %108 = vector.multi_reduction <maximumf>, %107, %cst_40 [1] : vector<2x16x32xf32> to vector<2x32xf32>
    %109 = arith.truncf %101 : vector<2x32xf32> to vector<2x32xbf16>
    %c0_41 = arith.constant 0 : index
    %c0_42 = arith.constant 0 : index
    %c0_43 = arith.constant 0 : index
    %110 = vector.load %arg5[%c0_41, %c0_42, %c0_43] : memref<6x32x32xbf16, #tpu.memory_space<vmem>>, vector<1x32x32xbf16>
    %111 = vector.shape_cast %110 : vector<1x32x32xbf16> to vector<32x32xbf16>
    %cst_44 = arith.constant dense<0.000000e+00> : vector<2x32xf32>
    %112 = tpu.matmul %109, %111, %cst_44 {dimension_numbers = #tpu.dot_dimension_numbers<[1], [0], [0], [1], [0, 0, 1, 1], [], []>} : vector<2x32xbf16>, vector<32x32xbf16>, vector<2x32xf32> -> vector<2x32xf32>
    %113 = arith.addf %89, %112 : vector<2x32xf32>
    %114 = arith.truncf %103 : vector<2x32xf32> to vector<2x32xbf16>
    %c1_45 = arith.constant 1 : index
    %c0_46 = arith.constant 0 : index
    %c0_47 = arith.constant 0 : index
    %115 = vector.load %arg5[%c1_45, %c0_46, %c0_47] : memref<6x32x32xbf16, #tpu.memory_space<vmem>>, vector<1x32x32xbf16>
    %116 = vector.shape_cast %115 : vector<1x32x32xbf16> to vector<32x32xbf16>
    %cst_48 = arith.constant dense<0.000000e+00> : vector<2x32xf32>
    %117 = tpu.matmul %114, %116, %cst_48 {dimension_numbers = #tpu.dot_dimension_numbers<[1], [0], [0], [1], [0, 0, 1, 1], [], []>} : vector<2x32xbf16>, vector<32x32xbf16>, vector<2x32xf32> -> vector<2x32xf32>
    %118 = arith.addf %113, %117 : vector<2x32xf32>
    %119 = arith.truncf %108 : vector<2x32xf32> to vector<2x32xbf16>
    %c2_49 = arith.constant 2 : index
    %c0_50 = arith.constant 0 : index
    %c0_51 = arith.constant 0 : index
    %120 = vector.load %arg5[%c2_49, %c0_50, %c0_51] : memref<6x32x32xbf16, #tpu.memory_space<vmem>>, vector<1x32x32xbf16>
    %121 = vector.shape_cast %120 : vector<1x32x32xbf16> to vector<32x32xbf16>
    %cst_52 = arith.constant dense<0.000000e+00> : vector<2x32xf32>
    %122 = tpu.matmul %119, %121, %cst_52 {dimension_numbers = #tpu.dot_dimension_numbers<[1], [0], [0], [1], [0, 0, 1, 1], [], []>} : vector<2x32xbf16>, vector<32x32xbf16>, vector<2x32xf32> -> vector<2x32xf32>
    %123 = arith.addf %118, %122 : vector<2x32xf32>
    %124 = arith.truncf %99 : vector<16x32xf32> to vector<16x32xbf16>
    %c0_53 = arith.constant 0 : index
    %c0_54 = arith.constant 0 : index
    %c0_55 = arith.constant 0 : index
    %125 = vector.load %arg3[%c0_53, %c0_54, %c0_55] : memref<2x32x32xbf16, #tpu.memory_space<vmem>>, vector<1x32x32xbf16>
    %126 = vector.shape_cast %125 : vector<1x32x32xbf16> to vector<32x32xbf16>
    %cst_56 = arith.constant dense<0.000000e+00> : vector<16x32xf32>
    %127 = tpu.matmul %124, %126, %cst_56 {dimension_numbers = #tpu.dot_dimension_numbers<[1], [0], [0], [1], [0, 0, 1, 1], [], []>} : vector<16x32xbf16>, vector<32x32xbf16>, vector<16x32xf32> -> vector<16x32xf32>
    %c0_57 = arith.constant 0 : index
    %c0_58 = arith.constant 0 : index
    %c0_59 = arith.constant 0 : index
    %128 = vector.load %arg4[%c0_57, %c0_58, %c0_59] : memref<2x1x32xf32, #tpu.memory_space<vmem>>, vector<1x1x32xf32>
    %129 = vector.shape_cast %128 : vector<1x1x32xf32> to vector<1x32xf32>
    %130 = vector.broadcast %129 : vector<1x32xf32> to vector<16x32xf32>
    %131 = arith.addf %127, %130 : vector<16x32xf32>
    %cst_60 = arith.constant 0.000000e+00 : f32
    %132 = vector.broadcast %cst_60 : f32 to vector<16x32xf32>
    %133 = arith.maximumf %131, %132 : vector<16x32xf32>
    %134 = arith.truncf %133 : vector<16x32xf32> to vector<16x32xbf16>
    %cst_61 = arith.constant dense<0.000000e+00> : vector<2x32xf32>
    %135 = tpu.matmul %44, %134, %cst_61 {dimension_numbers = #tpu.dot_dimension_numbers<[1], [0], [0], [1], [0, 0, 1, 1], [], []>} : vector<2x16xbf16>, vector<16x32xbf16>, vector<2x32xf32> -> vector<2x32xf32>
    %136 = vector.broadcast %50 : vector<2x1xf32> to vector<2x32xf32>
    %137 = arith.mulf %135, %136 : vector<2x32xf32>
    %138 = vector.shape_cast %133 : vector<16x32xf32> to vector<1x16x32xf32>
    %139 = vector.broadcast %138 : vector<1x16x32xf32> to vector<2x16x32xf32>
    %140 = vector.broadcast %54 : vector<2x16x1xf32> to vector<2x16x32xf32>
    %141 = arith.addf %139, %140 : vector<2x16x32xf32>
    %cst_62 = arith.constant dense<0xFF800000> : vector<2x32xf32>
    %142 = vector.multi_reduction <maximumf>, %141, %cst_62 [1] : vector<2x16x32xf32> to vector<2x32xf32>
    %143 = arith.truncf %135 : vector<2x32xf32> to vector<2x32xbf16>
    %c3 = arith.constant 3 : index
    %c0_63 = arith.constant 0 : index
    %c0_64 = arith.constant 0 : index
    %144 = vector.load %arg5[%c3, %c0_63, %c0_64] : memref<6x32x32xbf16, #tpu.memory_space<vmem>>, vector<1x32x32xbf16>
    %145 = vector.shape_cast %144 : vector<1x32x32xbf16> to vector<32x32xbf16>
    %cst_65 = arith.constant dense<0.000000e+00> : vector<2x32xf32>
    %146 = tpu.matmul %143, %145, %cst_65 {dimension_numbers = #tpu.dot_dimension_numbers<[1], [0], [0], [1], [0, 0, 1, 1], [], []>} : vector<2x32xbf16>, vector<32x32xbf16>, vector<2x32xf32> -> vector<2x32xf32>
    %147 = arith.addf %123, %146 : vector<2x32xf32>
    %148 = arith.truncf %137 : vector<2x32xf32> to vector<2x32xbf16>
    %c4 = arith.constant 4 : index
    %c0_66 = arith.constant 0 : index
    %c0_67 = arith.constant 0 : index
    %149 = vector.load %arg5[%c4, %c0_66, %c0_67] : memref<6x32x32xbf16, #tpu.memory_space<vmem>>, vector<1x32x32xbf16>
    %150 = vector.shape_cast %149 : vector<1x32x32xbf16> to vector<32x32xbf16>
    %cst_68 = arith.constant dense<0.000000e+00> : vector<2x32xf32>
    %151 = tpu.matmul %148, %150, %cst_68 {dimension_numbers = #tpu.dot_dimension_numbers<[1], [0], [0], [1], [0, 0, 1, 1], [], []>} : vector<2x32xbf16>, vector<32x32xbf16>, vector<2x32xf32> -> vector<2x32xf32>
    %152 = arith.addf %147, %151 : vector<2x32xf32>
    %153 = arith.truncf %142 : vector<2x32xf32> to vector<2x32xbf16>
    %c5 = arith.constant 5 : index
    %c0_69 = arith.constant 0 : index
    %c0_70 = arith.constant 0 : index
    %154 = vector.load %arg5[%c5, %c0_69, %c0_70] : memref<6x32x32xbf16, #tpu.memory_space<vmem>>, vector<1x32x32xbf16>
    %155 = vector.shape_cast %154 : vector<1x32x32xbf16> to vector<32x32xbf16>
    %cst_71 = arith.constant dense<0.000000e+00> : vector<2x32xf32>
    %156 = tpu.matmul %153, %155, %cst_71 {dimension_numbers = #tpu.dot_dimension_numbers<[1], [0], [0], [1], [0, 0, 1, 1], [], []>} : vector<2x32xbf16>, vector<32x32xbf16>, vector<2x32xf32> -> vector<2x32xf32>
    %157 = arith.addf %152, %156 : vector<2x32xf32>
    %158 = arith.truncf %133 : vector<16x32xf32> to vector<16x32xbf16>
    %c1_72 = arith.constant 1 : index
    %c0_73 = arith.constant 0 : index
    %c0_74 = arith.constant 0 : index
    %159 = vector.load %arg3[%c1_72, %c0_73, %c0_74] : memref<2x32x32xbf16, #tpu.memory_space<vmem>>, vector<1x32x32xbf16>
    %160 = vector.shape_cast %159 : vector<1x32x32xbf16> to vector<32x32xbf16>
    %cst_75 = arith.constant dense<0.000000e+00> : vector<16x32xf32>
    %161 = tpu.matmul %158, %160, %cst_75 {dimension_numbers = #tpu.dot_dimension_numbers<[1], [0], [0], [1], [0, 0, 1, 1], [], []>} : vector<16x32xbf16>, vector<32x32xbf16>, vector<16x32xf32> -> vector<16x32xf32>
    %c1_76 = arith.constant 1 : index
    %c0_77 = arith.constant 0 : index
    %c0_78 = arith.constant 0 : index
    %162 = vector.load %arg4[%c1_76, %c0_77, %c0_78] : memref<2x1x32xf32, #tpu.memory_space<vmem>>, vector<1x1x32xf32>
    %163 = vector.shape_cast %162 : vector<1x1x32xf32> to vector<1x32xf32>
    %164 = vector.broadcast %163 : vector<1x32xf32> to vector<16x32xf32>
    %165 = arith.addf %161, %164 : vector<16x32xf32>
    %cst_79 = arith.constant 0.000000e+00 : f32
    %166 = vector.broadcast %cst_79 : f32 to vector<16x32xf32>
    %167 = arith.maximumf %165, %166 : vector<16x32xf32>
    %168 = arith.truncf %167 : vector<16x32xf32> to vector<16x32xbf16>
    %cst_80 = arith.constant dense<0.000000e+00> : vector<2x32xf32>
    %169 = tpu.matmul %44, %168, %cst_80 {dimension_numbers = #tpu.dot_dimension_numbers<[1], [0], [0], [1], [0, 0, 1, 1], [], []>} : vector<2x16xbf16>, vector<16x32xbf16>, vector<2x32xf32> -> vector<2x32xf32>
    %170 = vector.broadcast %50 : vector<2x1xf32> to vector<2x32xf32>
    %171 = arith.mulf %169, %170 : vector<2x32xf32>
    %172 = vector.shape_cast %167 : vector<16x32xf32> to vector<1x16x32xf32>
    %173 = vector.broadcast %172 : vector<1x16x32xf32> to vector<2x16x32xf32>
    %174 = vector.broadcast %54 : vector<2x16x1xf32> to vector<2x16x32xf32>
    %175 = arith.addf %173, %174 : vector<2x16x32xf32>
    %cst_81 = arith.constant dense<0xFF800000> : vector<2x32xf32>
    %176 = vector.multi_reduction <maximumf>, %175, %cst_81 [1] : vector<2x16x32xf32> to vector<2x32xf32>
    %177 = arith.truncf %169 : vector<2x32xf32> to vector<2x32xbf16>
    %c3_82 = arith.constant 3 : index
    %c0_83 = arith.constant 0 : index
    %c0_84 = arith.constant 0 : index
    %178 = vector.load %arg5[%c3_82, %c0_83, %c0_84] : memref<6x32x32xbf16, #tpu.memory_space<vmem>>, vector<1x32x32xbf16>
    %179 = vector.shape_cast %178 : vector<1x32x32xbf16> to vector<32x32xbf16>
    %cst_85 = arith.constant dense<0.000000e+00> : vector<2x32xf32>
    %180 = tpu.matmul %177, %179, %cst_85 {dimension_numbers = #tpu.dot_dimension_numbers<[1], [0], [0], [1], [0, 0, 1, 1], [], []>} : vector<2x32xbf16>, vector<32x32xbf16>, vector<2x32xf32> -> vector<2x32xf32>
    %181 = arith.addf %157, %180 : vector<2x32xf32>
    %182 = arith.truncf %171 : vector<2x32xf32> to vector<2x32xbf16>
    %c4_86 = arith.constant 4 : index
    %c0_87 = arith.constant 0 : index
    %c0_88 = arith.constant 0 : index
    %183 = vector.load %arg5[%c4_86, %c0_87, %c0_88] : memref<6x32x32xbf16, #tpu.memory_space<vmem>>, vector<1x32x32xbf16>
    %184 = vector.shape_cast %183 : vector<1x32x32xbf16> to vector<32x32xbf16>
    %cst_89 = arith.constant dense<0.000000e+00> : vector<2x32xf32>
    %185 = tpu.matmul %182, %184, %cst_89 {dimension_numbers = #tpu.dot_dimension_numbers<[1], [0], [0], [1], [0, 0, 1, 1], [], []>} : vector<2x32xbf16>, vector<32x32xbf16>, vector<2x32xf32> -> vector<2x32xf32>
    %186 = arith.addf %181, %185 : vector<2x32xf32>
    %187 = arith.truncf %176 : vector<2x32xf32> to vector<2x32xbf16>
    %c5_90 = arith.constant 5 : index
    %c0_91 = arith.constant 0 : index
    %c0_92 = arith.constant 0 : index
    %188 = vector.load %arg5[%c5_90, %c0_91, %c0_92] : memref<6x32x32xbf16, #tpu.memory_space<vmem>>, vector<1x32x32xbf16>
    %189 = vector.shape_cast %188 : vector<1x32x32xbf16> to vector<32x32xbf16>
    %cst_93 = arith.constant dense<0.000000e+00> : vector<2x32xf32>
    %190 = tpu.matmul %187, %189, %cst_93 {dimension_numbers = #tpu.dot_dimension_numbers<[1], [0], [0], [1], [0, 0, 1, 1], [], []>} : vector<2x32xbf16>, vector<32x32xbf16>, vector<2x32xf32> -> vector<2x32xf32>
    %191 = arith.addf %186, %190 : vector<2x32xf32>
    %c0_94 = arith.constant 0 : index
    %c0_95 = arith.constant 0 : index
    %192 = vector.load %arg6[%c0_94, %c0_95] : memref<1x32xf32, #tpu.memory_space<vmem>>, vector<1x32xf32>
    %193 = vector.broadcast %192 : vector<1x32xf32> to vector<2x32xf32>
    %194 = arith.addf %191, %193 : vector<2x32xf32>
    %cst_96 = arith.constant 0.000000e+00 : f32
    %195 = vector.broadcast %cst_96 : f32 to vector<2x32xf32>
    %196 = arith.maximumf %194, %195 : vector<2x32xf32>
    %197 = arith.truncf %196 : vector<2x32xf32> to vector<2x32xbf16>
    %c0_97 = arith.constant 0 : index
    %c0_98 = arith.constant 0 : index
    %198 = vector.load %arg7[%c0_97, %c0_98] : memref<32x16xbf16, #tpu.memory_space<vmem>>, vector<32x16xbf16>
    %cst_99 = arith.constant dense<0.000000e+00> : vector<2x16xf32>
    %199 = tpu.matmul %197, %198, %cst_99 {dimension_numbers = #tpu.dot_dimension_numbers<[1], [0], [0], [1], [0, 0, 1, 1], [], []>} : vector<2x32xbf16>, vector<32x16xbf16>, vector<2x16xf32> -> vector<2x16xf32>
    %c0_100 = arith.constant 0 : index
    %c0_101 = arith.constant 0 : index
    %200 = vector.load %arg8[%c0_100, %c0_101] : memref<1x16xf32, #tpu.memory_space<vmem>>, vector<1x16xf32>
    %201 = vector.broadcast %200 : vector<1x16xf32> to vector<2x16xf32>
    %202 = arith.addf %199, %201 : vector<2x16xf32>
    %cst_102 = arith.constant 0.000000e+00 : f32
    %203 = vector.broadcast %cst_102 : f32 to vector<2x16xf32>
    %204 = arith.maximumf %202, %203 : vector<2x16xf32>
    %205 = arith.truncf %204 : vector<2x16xf32> to vector<2x16xbf16>
    %c0_103 = arith.constant 0 : index
    %c0_104 = arith.constant 0 : index
    %206 = vector.load %arg9[%c0_103, %c0_104] : memref<16x128xbf16, #tpu.memory_space<vmem>>, vector<16x128xbf16>
    %cst_105 = arith.constant dense<0.000000e+00> : vector<2x128xf32>
    %207 = tpu.matmul %205, %206, %cst_105 {dimension_numbers = #tpu.dot_dimension_numbers<[1], [0], [0], [1], [0, 0, 1, 1], [], []>} : vector<2x16xbf16>, vector<16x128xbf16>, vector<2x128xf32> -> vector<2x128xf32>
    %c0_106 = arith.constant 0 : index
    %c0_107 = arith.constant 0 : index
    %208 = vector.load %arg10[%c0_106, %c0_107] : memref<1x128xf32, #tpu.memory_space<vmem>>, vector<1x128xf32>
    %209 = vector.broadcast %208 : vector<1x128xf32> to vector<2x128xf32>
    %210 = arith.addf %207, %209 : vector<2x128xf32>
    %c0_108 = arith.constant 0 : index
    %c0_109 = arith.constant 0 : index
    %211 = vector.load %arg11[%c0_108, %c0_109] : memref<2x128xf32, #tpu.memory_space<vmem>>, vector<2x128xf32>
    tpu.vector_store %arg11[%c0_108, %c0_109], %210 {strides = array<i32>} : memref<2x128xf32, #tpu.memory_space<vmem>>, vector<2x128xf32>,
    return
  }
}

</mosaic_0001>

<bundles_post_ra>
// kernel: net_forward.1
= control target key start
LH: loop header
LB: loop body
LE: loop exit
PB: predicated region body
PF: predicated region fallthrough
CT: control target
= control target key end

     0   :  { %16 = vsyncpa [#allocation3], 0  ;;  %s2494_s0 = inlined_call_operand.vmem [shape: s32[16,4], index: 0, kind: input, shape index: {}]   ;;  %s2495_s1 = inlined_call_operand.vmem [shape: s32[1,16], index: 1, kind: input, shape index: {}]   ;;  %s2496_s2 = inlined_call_operand.vmem [shape: bf16[32,32], index: 2, kind: input, shape index: {}]   ;;  %s2497_s3 = inlined_call_operand.vmem [shape: bf16[2,32,32], index: 3, kind: input, shape index: {}]   ;;  %s2498_s4 = inlined_call_operand.hbm [shape: f32[2,1,32], index: 4, kind: input, shape index: {}]   ;;  %s2499_s5 = inlined_call_operand.hbm [shape: bf16[6,32,32], index: 5, kind: input, shape index: {}]   ;;  %s2500_s6 = inlined_call_operand.hbm [shape: f32[1,32], index: 6, kind: input, shape index: {}]   ;;  %s2501_s7 = inlined_call_operand.vmem [shape: bf16[32,16], index: 7, kind: input, shape index: {}]   ;;  %s2502_s8 = inlined_call_operand.hbm [shape: f32[1,16], index: 8, kind: input, shape index: {}]   ;;  %s2503_s9 = inlined_call_operand.hbm [shape: bf16[16,128], index: 9, kind: input, shape index: {}]   ;;  %s2504_s10 = inlined_call_operand.hbm [shape: f32[1,128], index: 10, kind: input, shape index: {}]   ;;  %s2505_s11 = inlined_call_operand.hbm [shape: f32[2,128], index: 11, kind: output, shape index: {}]  }
   0x1   :  { %17 = vsyncpa [#allocation6], 0 }
   0x2   :  { %18 = vsyncpa [#allocation9], 0 }
   0x3   :  { %19 = vsyncpa [#allocation12], 0 }
   0x4   :  { %20 = vsyncpa [#allocation4], 0  ;;  %s2098_s17 = smov [#allocation5]  }
   0x5   :  { %s46_s18 = sshll.u32 %s2098_s17, 4  ;;  %s47_s18 = int_to_ptr.vmem [resolvable:$true] %s46_s18 }
   0x6   :  { %s1956_s19 = scalar_lea.vmem %s47_s18, 1536  ;;  %p1961_p1 = scmp.lt.s32.totalorder %s47_s18, %s47_s18 }
   0x7   :  { %p1957_p0 = scmp.ne.s32.totalorder %s47_s18, %s1956_s19  ;;  %p1962_p2 = scmp.lt.s32.totalorder %s1956_s19, %s1956_s19 }
   0x9   :  { %p1963_p3 = por %p1962_p2, %p1961_p1 }
   0xb   :  { %p1964_p4 = pnand %p1963_p3, %p1957_p0 }
   0xd   :  { %1967 = shalt.err (!%p1964_p4)
}
   0xe   :  { %s2099_s20 = smov 64   ;;  %s2100_s21 = smov 4  }
   0xf   :  { %52 = dma.hbm_to_vmem [thread:$0]  %s2499_s5, 1536, %s47_s18, [#allocation6], %s2099_s20, %s2099_s20, %s2100_s21  }
  0x10   :  { %s2101_s24 = smov [#allocation8]   ;;  %s2102_s26 = smov [#allocation2]  }
  0x11   :  { %s71_s25 = sshll.u32 %s2101_s24, 4  ;;  %s34_s27 = sshll.u32 %s2102_s26, 4  ;;  %s72_s25 = int_to_ptr.vmem [resolvable:$true] %s71_s25  ;;  %s35_s27 = int_to_ptr.vmem [resolvable:$true] %s34_s27 }
  0x12   :  { %s1976_s28 = scalar_lea.vmem %s72_s25, 16  ;;  %s1980_s29 = scalar_lea.vmem %s72_s25, 32 }
  0x13   :  { %p1977_p5 = scmp.ne.s32.totalorder %s72_s25, %s1976_s28  ;;  %p1981_p6 = scmp.lt.s32.totalorder %s72_s25, %s72_s25 }
  0x14   :  { %p1982_p7 = scmp.lt.s32.totalorder %s1980_s29, %s1976_s28 }
  0x16   :  { %p1983_p8 = por %p1982_p7, %p1981_p6 }
  0x18   :  { %p1984_p9 = pnand %p1983_p8, %p1977_p5 }
  0x1a   :  { %1987 = shalt.err (!%p1984_p9)
}
  0x1b   :  { %74 = dma.hbm_to_vmem [thread:$0]  %s2502_s8, 16, %s72_s25, [#allocation9]  }
  0x1c   :  { %s1996_s13 = scalar_lea.vmem %s35_s27, 32  ;;  %p2001_p11 = scmp.lt.s32.totalorder %s35_s27, %s35_s27 }
  0x1d   :  { %p1997_p10 = scmp.ne.s32.totalorder %s35_s27, %s1996_s13  ;;  %p2002_p12 = scmp.lt.s32.totalorder %s1996_s13, %s1996_s13 }
  0x1f   :  { %p2003_p13 = por %p2002_p12, %p2001_p11 }
  0x21   :  { %p2004_p0 = pnand %p2003_p13, %p1997_p10 }
  0x23   :  { %2007 = shalt.err (!%p2004_p0)
}
  0x24   :  { %s2103_s5 = smov 16   ;;  %s2104_s14 = smov 1  }
  0x25   :  { %40 = dma.hbm_to_vmem [thread:$0]  %s2498_s4, 32, %s35_s27, [#allocation3], %s2103_s5, %s2103_s5, %s2104_s14  }
  0x26   :  { %s2105_s17 = smov [#allocation7]   ;;  %s2106_s19 = smov [#allocation10]  }
  0x27   :  { %s59_s18 = sshll.u32 %s2105_s17, 4  ;;  %s80_s22 = sshll.u32 %s2106_s19, 4  ;;  %s60_s18 = int_to_ptr.vmem [resolvable:$true] %s59_s18  ;;  %s81_s22 = int_to_ptr.vmem [resolvable:$true] %s80_s22 }
  0x28   :  { %s2016_s8 = scalar_lea.vmem %s60_s18, 16  ;;  %s2020_s23 = scalar_lea.vmem %s60_s18, 32 }
  0x29   :  { %p2017_p1 = scmp.ne.s32.totalorder %s60_s18, %s2016_s8  ;;  %p2021_p2 = scmp.lt.s32.totalorder %s60_s18, %s60_s18 }
  0x2a   :  { %p2022_p3 = scmp.lt.s32.totalorder %s2020_s23, %s2016_s8 }
  0x2c   :  { %p2023_p4 = por %p2022_p3, %p2021_p2 }
  0x2e   :  { %p2024_p5 = pnand %p2023_p4, %p2017_p1 }
  0x30   :  { %2027 = shalt.err (!%p2024_p5)
}
  0x31   :  { %62 = dma.hbm_to_vmem [thread:$0]  %s2500_s6, 16, %s60_s18, [#allocation6]  }
  0x32   :  { %s2036_s26 = scalar_lea.vmem %s81_s22, 128  ;;  %p2041_p7 = scmp.lt.s32.totalorder %s81_s22, %s81_s22 }
  0x33   :  { %p2037_p6 = scmp.ne.s32.totalorder %s81_s22, %s2036_s26  ;;  %p2042_p8 = scmp.lt.s32.totalorder %s2036_s26, %s2036_s26 }
  0x35   :  { %p2043_p9 = por %p2042_p8, %p2041_p7 }
  0x37   :  { %p2044_p10 = pnand %p2043_p9, %p2037_p6 }
  0x39   :  { %2047 = shalt.err (!%p2044_p10)
}
  0x3a   :  { %86 = dma.hbm_to_vmem [thread:$0]  %s2503_s9, 128, %s81_s22, [#allocation9], %s2099_s20, %s2099_s20, %s2100_s21  }
  0x3b   :  { %s2107_s28 = smov [#allocation11]  }
  0x3c   :  { %s93_s29 = sshll.u32 %s2107_s28, 4  ;;  %s94_s29 = int_to_ptr.vmem [resolvable:$true] %s93_s29 }
  0x3d   :  { %s2056_s30 = scalar_lea.vmem %s94_s29, 16  ;;  %s2060_s6 = scalar_lea.vmem %s94_s29, 32 }
  0x3e   :  { %p2057_p11 = scmp.ne.s32.totalorder %s94_s29, %s2056_s30  ;;  %p2061_p12 = scmp.lt.s32.totalorder %s94_s29, %s94_s29 }
  0x3f   :  { %p2062_p13 = scmp.lt.s32.totalorder %s2060_s6, %s2056_s30 }
  0x41   :  { %p2063_p0 = por %p2062_p13, %p2061_p12 }
  0x43   :  { %p2064_p1 = pnand %p2063_p0, %p2057_p11 }
  0x45   :  { %2067 = shalt.err (!%p2064_p1)
}
  0x46   :  { %96 = dma.hbm_to_vmem [thread:$0]  %s2504_s10, 16, %s94_s29, [#allocation12]  }
  0x47   :  { %2088 = dma.done.wait [#allocation3], 32  }
  0x48   :  { %2089 = vsyncadd [#allocation3], 4294967264 }
  0x49   :  { %2090 = dma.done.wait [#allocation6], 1552  }
  0x4a   :  { %2091 = vsyncadd [#allocation6], 4294965744 }
  0x4b   :  { %2092 = dma.done.wait [#allocation9], 144  }
  0x4c   :  { %2093 = vsyncadd [#allocation9], 4294967152 }
  0x4d   :  { %2094 = dma.done.wait [#allocation12], 16  }
  0x4e   :  { %2095 = vsyncadd [#allocation12], 4294967280  ;;  %v2108_v0 = vmov 0   ;;  %v2109_v1 = vmov 1   ;;  %v2110_v2 = vmov 0.0   ;;  %v116_v3 = vld [vmem:[%s2494_s0] sm:$0xff]  ;;  %v118_v16 = vlaneseq }
  0x4f   :  { %1919 = vset.pattern.permute.xlu0 %v2108_v0  ;;  %1920 = vset.pattern.permute.xlu1 %v2109_v1  ;;  %v117_v4 = vld [vmem:[%s2494_s0 + $0x8] sm:$0xff]  ;;  %v134_v5 = vadd.s32 8, %v116_v3  ;;  %v150_v7 = vadd.s32 16, %v116_v3  ;;  %v2111_v10 = vmov 2   ;;  %v166_v11 = vadd.s32 24, %v116_v3  ;;  %v1926_v14 = vld [vmem:[%s2496_s2] sm:$0xff]  }
  0x50   :  { %1727 = vmatprep.subr.bf16.mxu0 %v2110_v2  ;;  %1735 = vmatprep.subr.bf16.mxu1 %v2110_v2  ;;  %v135_v6 = vadd.s32 8, %v117_v4  ;;  %v151_v8 = vadd.s32 16, %v117_v4  ;;  %v167_v9 = vadd.s32 24, %v117_v4  ;;  %v1925_v12 = vld [vmem:[%s2496_s2 + $0x8] sm:$0xff]   ;;  %v2112_v13 = vmov 3   ;;  %v2241_v41 = vld [vmem:[%s2497_s3] sm:$0xff]  }
  0x51   :  { %121 = vperm.xlu0 %1919, %v116_v3   ;;  %137 = vperm.xlu1 %1920, %v134_v5   ;;  %vm2113_vm0 = vmmov 0   ;;  %v119_v19 = vand.u32 127, %v118_v16  ;;  %vm199_vm9 = vcmask 261120   ;;  %v2234_v40 = vld [vmem:[%s2497_s3 + $0x8] sm:$0xff]   ;;  %v245_v42 = vshrl.u32 %v118_v16, 7  ;;  %v2254_v57 = vld [vmem:[#allocation5 + $0x18] sm:$0xff]  }
  0x52   :  { %1728 = vmatpush3.bf16.msra.mxu0 %v1925_v12  ;;  %1731 = vmatprep.mubr.msk.bf16.mxu0 %vm2113_vm0, %v2110_v2  ;;  %v1611_v43 = vld [vmem:[%s2495_s1] ss:$0 sm:$0xff]  ;;  %v2114_v45 = vmov -1e+30   ;;  %vm255_vm11 = vcmask 123904   ;;  %vm355_vm12 = vcmask 130048  }
  0x53   :  { %1729 = vmatprep.subr.bf16.mxu0 %v2110_v2  ;;  %1739 = vmatprep.mubr.msk.bf16.mxu1 %vm2113_vm0, %v2110_v2  ;;  %vm251_vm10 = vcmp.eq.s32.totalorder %v245_v42, %v1611_v43  ;;  %v264_v44 = vsub.s32 0, %v245_v42  ;;  %v275_v48 = vsub.s32 1, %v245_v42  ;;  %v2262_v60 = vld [vmem:[#allocation2] ss:$0 sm:$0xff]  ;;  %vm554_vm13 = vcmask 1041409  }
  0x54   :  { %1736 = vmatpush3.bf16.msra.mxu1 %v2234_v40  ;;  %v261_v46 = vsel %vm251_vm10, 0.0, %v2114_v45  ;;  %v1612_v55 = vsel %vm251_vm10, 1.0, %v2110_v2  ;;  %v2300_v45 = vld [vmem:[%s2497_s3 + $0x18] sm:$0xff]  }
  0x55   :  { %124 = vperm.xlu0 %1919, %v117_v4   ;;  %140 = vperm.xlu1 %1920, %v135_v6   ;;  %v265_v47 = vrot.slane %v261_v46, %v264_v44  ;;  %v276_v49 = vrot.slane %v261_v46, %v275_v48  ;;  %v256_v56 = vsel %vm255_vm11, %v1612_v55, 0.0 }
  0x56   :  { %1730 = vmatpush3.bf16.msra.mxu0 %v1926_v14  ;;  %1737 = vmatprep.subr.bf16.mxu1 %v2110_v2 }
  0x57   :  { %1743 = vmatprep.subr.bf16.mxu0 %v2110_v2 }
  0x58   :  { %1738 = vmatpush3.bf16.msra.mxu1 %v2241_v41 }
  0x59   :  { %1921 = vset.pattern.permute.xlu0 %v2111_v10  ;;  %1922 = vset.pattern.permute.xlu1 %v2111_v10 }
  0x5a   :  { %153 = vperm.xlu0 %1921, %v150_v7   ;;  %156 = vperm.xlu1 %1922, %v151_v8  }
  0x5b   :  { %1749 = vmatprep.subr.bf16.mxu1 %v2110_v2 }
  0x5e   :  { %1924 = vset.pattern.permute.xlu0 %v2112_v13  ;;  %1923 = vset.pattern.permute.xlu1 %v2112_v13  ;;  %v2276_v13 = vpack.c.bf16 %v1612_v55, %v1612_v55 }
  0x5f   :  { %172 = vperm.xlu0 %1924, %v167_v9   ;;  %169 = vperm.xlu1 %1923, %v166_v11  }
  0x63   :  { %267 = vbcast.lane.b32.xlu0 %v265_v47, 256 }
  0x67   :  { %271 = vbcast.lane.b32.xlu0 %v265_v47, 264 }
  0x6b   :  { %278 = vbcast.lane.b32.xlu0 %v276_v49, 256 }
  0x6f   :  { %282 = vbcast.lane.b32.xlu0 %v276_v49, 264  ;;  %v2303_v49 = vld [vmem:[#allocation5 + $0x28] sm:$0xff]  }
  0x83   :  { %257 = vadd.xlane.f32.xlu1 %v256_v56 }
  0xcc   :  { %v122_v15 = vpop.permute.xlu0 %121  ;;  %v138_v17 = vpop.permute.xlu1 %137 }
  0xcd   :  { %vm126_vm2 = vcmp.eq.s32.totalorder %v119_v19, %v122_v15  ;;  %vm142_vm3 = vcmp.eq.s32.totalorder %v119_v19, %v138_v17 }
  0xce   :  { %v1600_v24 = vsel %vm126_vm2, 1.0, %v2110_v2  ;;  %v1602_v25 = vsel %vm142_vm3, 1.0, %v2110_v2 }
  0xcf   :  { %v148_v31 = vadd.f32 %v1602_v25, %v1600_v24 }
  0xd0   :  { %v125_v18 = vpop.permute.xlu0 %124  ;;  %v141_v20 = vpop.permute.xlu1 %140 }
  0xd1   :  { %vm143_vm1 = vcmp.eq.s32.totalorder %v119_v19, %v141_v20  ;;  %vm127_vm4 = vcmp.eq.s32.totalorder %v119_v19, %v125_v18  ;;  %v1929_v18 = vld [vmem:[#allocation5 + $0x8] sm:$0xff]  }
  0xd2   :  { %v1603_v22 = vsel %vm143_vm1, 1.0, %v2110_v2  ;;  %v1601_v26 = vsel %vm127_vm4, 1.0, %v2110_v2 }
  0xd3   :  { %v149_v27 = vadd.f32 %v1603_v22, %v1601_v26 }
  0xd5   :  { %v154_v21 = vpop.permute.xlu0 %153  ;;  %v157_v23 = vpop.permute.xlu1 %156 }
  0xd6   :  { %vm158_vm5 = vcmp.eq.s32.totalorder %v119_v19, %v154_v21  ;;  %vm159_vm6 = vcmp.eq.s32.totalorder %v119_v19, %v157_v23 }
  0xd7   :  { %v1605_v28 = vsel %vm159_vm6, 1.0, %v2110_v2  ;;  %v1604_v29 = vsel %vm158_vm5, 1.0, %v2110_v2 }
  0xd8   :  { %v165_v32 = vadd.f32 %v1605_v28, %v149_v27  ;;  %v164_v35 = vadd.f32 %v1604_v29, %v148_v31 }
  0xda   :  { %v173_v30 = vpop.permute.xlu0 %172  ;;  %v170_v34 = vpop.permute.xlu1 %169 }
  0xdb   :  { %vm175_vm7 = vcmp.eq.s32.totalorder %v119_v19, %v173_v30  ;;  %vm174_vm8 = vcmp.eq.s32.totalorder %v119_v19, %v170_v34 }
  0xdc   :  { %v1607_v33 = vsel %vm175_vm7, 1.0, %v2110_v2  ;;  %v1606_v36 = vsel %vm174_vm8, 1.0, %v2110_v2 }
  0xdd   :  { %v181_v37 = vadd.f32 %v1607_v33, %v165_v32  ;;  %v180_v38 = vadd.f32 %v1606_v36, %v164_v35 }
  0xde   :  { %v2258_v58 = vpop.permute.xlu0 %267 }
  0xdf   :  { %v182_v39 = vpack.c.bf16 %v181_v37, %v180_v38  ;;  %v1931_v38 = vld [vmem:[#allocation5] sm:$0xff]  }
  0xe1   :  { %1732 = vmatmul.mubr.msk.bf16.vlgmr.msra.gmra.mxu0 %vm199_vm9, %v182_v39  ;;  %v2290_v39 = vld [vmem:[#allocation5 + $0x10] sm:$0xff]  }
  0xe2   :  { %1745 = vmatprep.mubr.msk.bf16.mxu0 %vm2113_vm0, %v2110_v2  ;;  %v2260_v59 = vpop.permute.xlu0 %271 }
  0xe6   :  { %v2264_v62 = vpop.permute.xlu0 %278 }
  0xea   :  { %v2268_v6 = vpop.permute.xlu0 %282 }
 0x10c   :  { %v258_v42 = vpop.xlane.xlu1 %257 }
 0x10d   :  { %1946 = vrcp.f32 %v258_v42 }
 0x11a   :  { %v2295_v43 = vpop.eup %1946 }
 0x1a1   :  { %v237_v50 = vpop.f32.mrf.mxu0 }
 0x1a3   :  { %v1733_v51 = vpop.f32.mrf.mxu0 }
 0x1a5   :  { %v240_v52 = vpop.f32.mrf.mxu0 }
 0x1a6   :  { %v284_v53 = vpack.c.bf16 %v240_v52, %v237_v50  ;;  %v2310_v52 = vld [vmem:[%s2497_s3 + $0x10] sm:$0xff]  }
 0x1a7   :  { %v1734_v54 = vpop.f32.mrf.mxu0 }
 0x1a8   :  { %1740 = vmatmul.mubr.msk.bf16.vlgmr.msra.gmra.mxu1 %vm199_vm9, %v284_v53  ;;  %v2317_v54 = vld [vmem:[#allocation5 + $0x20] sm:$0xff]  }
 0x1a9   :  { %1753 = vmatprep.mubr.msk.bf16.mxu1 %vm2113_vm0, %v2110_v2  ;;  %1750 = vmatpush3.bf16.msra.mxu1 %v2254_v57 }
 0x1aa   :  { %1751 = vmatprep.subr.bf16.mxu1 %v2110_v2 }
 0x1ad   :  { %1752 = vmatpush3.bf16.msra.mxu1 %v2290_v39 }
 0x1ae   :  { %1765 = vmatprep.subr.bf16.mxu1 %v2110_v2 }
 0x268   :  { %v345_v61 = vpop.f32.mrf.mxu1 }
 0x269   :  { %v346_v63 = vadd.f32 %v2262_v60, %v345_v61 }
 0x26a   :  { %v1741_v0 = vpop.f32.mrf.mxu1 }
 0x26b   :  { %v352_v1 = vmax.f32 %v346_v63, 0.0 }
 0x26c   :  { %v348_v3 = vpop.f32.mrf.mxu1 }
 0x26d   :  { %v349_v4 = vadd.f32 %v2262_v60, %v348_v3  ;;  %v400_v7 = vadd.f32 %v352_v1, %v2258_v58  ;;  %v402_v8 = vadd.f32 %v352_v1, %v2264_v62 }
 0x26e   :  { %v1742_v5 = vpop.f32.mrf.mxu1 }
 0x26f   :  { %v353_v9 = vmax.f32 %v349_v4, 0.0  ;;  %v404_v14 = vsel %vm199_vm9, %v400_v7, -inf  ;;  %v413_v16 = vsel %vm199_vm9, %v402_v8, -inf  ;;  %v2335_v7 = vld [vmem:[#allocation2 + $0x1] ss:$0 sm:$0xff] }
 0x271   :  { %v2272_v10 = vpack.c.bf16 %v353_v9, %v352_v1  ;;  %v401_v11 = vadd.f32 %v353_v9, %v2260_v59  ;;  %v403_v12 = vadd.f32 %v353_v9, %v2268_v6 }
 0x273   :  { %v405_v15 = vsel %vm199_vm9, %v401_v11, -inf  ;;  %v414_v17 = vsel %vm199_vm9, %v403_v12, -inf  ;;  %1744 = vmatpush3.bf16.msra.mxu0 %v2272_v10 }
 0x274   :  { %v406_v19 = vmax.f32 %v404_v14, %v405_v15  ;;  %v415_v20 = vmax.f32 %v413_v16, %v414_v17  ;;  %1757 = vmatprep.subr.bf16.mxu0 %v2110_v2 }
 0x276   :  { %v407_v21 = vrot.slane %v406_v19, 4  ;;  %v416_v22 = vrot.slane %v415_v20, 4  ;;  %1746 = vmatmul.mubr.msk.bf16.vlgmr.msra.gmra.mxu0 %vm355_vm12, %v2276_v13 }
 0x277   :  { %1758 = vmatpush3.bf16.msra.mxu0 %v1929_v18  ;;  %1761 = vmatprep.mubr.msk.bf16.mxu0 %vm2113_vm0, %v2110_v2 }
 0x278   :  { %v408_v23 = vmax.f32 %v406_v19, %v407_v21  ;;  %v417_v24 = vmax.f32 %v415_v20, %v416_v22  ;;  %1759 = vmatprep.subr.bf16.mxu0 %v2110_v2 }
 0x27a   :  { %v409_v25 = vrot.slane %v408_v23, 2  ;;  %v418_v26 = vrot.slane %v417_v24, 2 }
 0x27b   :  { %1760 = vmatpush3.bf16.msra.mxu0 %v1931_v38 }
 0x27c   :  { %v410_v27 = vmax.f32 %v408_v23, %v409_v25  ;;  %v419_v28 = vmax.f32 %v417_v24, %v418_v26  ;;  %1773 = vmatprep.subr.bf16.mxu0 %v2110_v2 }
 0x27e   :  { %v411_v29 = vrot.slane %v410_v27, 1  ;;  %v420_v30 = vrot.slane %v419_v28, 1 }
 0x280   :  { %v412_v31 = vmax.f32 %v410_v27, %v411_v29  ;;  %v421_v32 = vmax.f32 %v419_v28, %v420_v30 }
 0x282   :  { %v543_v33 = vpack.c.bf16 %v412_v31, %v412_v31  ;;  %v544_v34 = vpack.c.bf16 %v421_v32, %v421_v32 }
 0x284   :  { %v552_v35 = vunpack.c.l.b16 %v543_v33  ;;  %v553_v36 = vunpack.c.l.b16 %v544_v34 }
 0x286   :  { %v555_v37 = vsel %vm554_vm13, %v553_v36, %v552_v35 }
 0x287   :  { %v556_v55 = vpack.c.b16 %v555_v37, %v555_v37 }
 0x336   :  { %v393_v44 = vpop.f32.mrf.mxu0 }
 0x337   :  { %v399_v46 = vmul.f32 %v2295_v43, %v393_v44  ;;  %v422_v47 = vpack.c.bf16 %v393_v44, %v393_v44 }
 0x338   :  { %v1747_v48 = vpop.f32.mrf.mxu0 }
 0x339   :  { %v427_v50 = vpack.c.bf16 %v399_v46, %v399_v46  ;;  %1762 = vmatmul.mubr.msk.bf16.vlgmr.msra.gmra.mxu0 %vm199_vm9, %v422_v47 }
 0x33a   :  { %v396_v51 = vpop.f32.mrf.mxu0  ;;  %1774 = vmatpush3.bf16.msra.mxu0 %v2300_v45  ;;  %1777 = vmatprep.mubr.msk.bf16.mxu0 %vm2113_vm0, %v2110_v2 }
 0x33b   :  { %1754 = vmatmul.mubr.msk.bf16.vlgmr.msra.gmra.mxu1 %vm199_vm9, %v427_v50  ;;  %1775 = vmatprep.subr.bf16.mxu0 %v2110_v2 }
 0x33c   :  { %v1748_v53 = vpop.f32.mrf.mxu0  ;;  %1766 = vmatpush3.bf16.msra.mxu1 %v2303_v49  ;;  %1769 = vmatprep.mubr.msk.bf16.mxu1 %vm2113_vm0, %v2110_v2 }
 0x33d   :  { %1767 = vmatprep.subr.bf16.mxu1 %v2110_v2 }
 0x33e   :  { %1776 = vmatpush3.bf16.msra.mxu0 %v2310_v52 }
 0x33f   :  { %1787 = vmatprep.subr.bf16.mxu0 %v2110_v2 }
 0x340   :  { %1768 = vmatpush3.bf16.msra.mxu1 %v2317_v54 }
 0x341   :  { %1778 = vmatmul.mubr.msk.bf16.vlgmr.msra.gmra.mxu0 %vm199_vm9, %v2272_v10  ;;  %1781 = vmatprep.subr.bf16.mxu1 %v2110_v2 }
 0x342   :  { %1788 = vmatpush3.bf16.msra.mxu0 %v1929_v18  ;;  %1791 = vmatprep.mubr.msk.bf16.mxu0 %vm2113_vm0, %v2110_v2 }
 0x343   :  { %1770 = vmatmul.mubr.msk.bf16.vlgmr.msra.gmra.mxu1 %vm199_vm9, %v556_v55  ;;  %1789 = vmatprep.subr.bf16.mxu0 %v2110_v2 }
 0x344   :  { %1783 = vmatprep.mubr.msk.bf16.mxu1 %vm2113_vm0, %v2110_v2 }
 0x346   :  { %1790 = vmatpush3.bf16.msra.mxu0 %v1931_v38 }
 0x347   :  { %1803 = vmatprep.subr.bf16.mxu0 %v2110_v2 }
 0x3f9   :  { %v537_v56 = vpop.f32.mrf.mxu0 }
 0x3fb   :  { %v482_v61 = vpop.f32.mrf.mxu1  ;;  %v1763_v63 = vpop.f32.mrf.mxu0 }
 0x3fc   :  { %v538_v0 = vadd.f32 %v537_v56, %v482_v61 }
 0x3fd   :  { %v1755_v1 = vpop.f32.mrf.mxu1  ;;  %v540_v3 = vpop.f32.mrf.mxu0 }
 0x3ff   :  { %v485_v4 = vpop.f32.mrf.mxu1  ;;  %v1764_v5 = vpop.f32.mrf.mxu0 }
 0x401   :  { %v1756_v8 = vpop.f32.mrf.mxu1  ;;  %v675_v9 = vpop.f32.mrf.mxu0 }
 0x402   :  { %v676_v10 = vadd.f32 %v2335_v7, %v675_v9 }
 0x403   :  { %v606_v11 = vpop.f32.mrf.mxu1  ;;  %v1779_v12 = vpop.f32.mrf.mxu0 }
 0x404   :  { %v682_v14 = vmax.f32 %v676_v10, 0.0  ;;  %v2338_v15 = vadd.f32 %v606_v11, %v538_v0 }
 0x405   :  { %v1771_v16 = vpop.f32.mrf.mxu1  ;;  %v678_v17 = vpop.f32.mrf.mxu0 }
 0x406   :  { %v679_v18 = vadd.f32 %v2335_v7, %v678_v17  ;;  %v726_v21 = vadd.f32 %v682_v14, %v2258_v58  ;;  %v728_v22 = vadd.f32 %v682_v14, %v2264_v62 }
 0x407   :  { %v609_v19 = vpop.f32.mrf.mxu1  ;;  %v1780_v20 = vpop.f32.mrf.mxu0 }
 0x408   :  { %v683_v23 = vmax.f32 %v679_v18, 0.0  ;;  %v730_v28 = vsel %vm199_vm9, %v726_v21, -inf  ;;  %v739_v29 = vsel %vm199_vm9, %v728_v22, -inf }
 0x409   :  { %v1772_v24 = vpop.f32.mrf.mxu1 }
 0x40a   :  { %v684_v25 = vpack.c.bf16 %v683_v23, %v682_v14  ;;  %v727_v26 = vadd.f32 %v683_v23, %v2260_v59  ;;  %v729_v27 = vadd.f32 %v683_v23, %v2268_v6 }
 0x40c   :  { %v731_v30 = vsel %vm199_vm9, %v727_v26, -inf  ;;  %v740_v31 = vsel %vm199_vm9, %v729_v27, -inf  ;;  %1782 = vmatpush3.bf16.msra.mxu1 %v684_v25 }
 0x40d   :  { %v732_v32 = vmax.f32 %v730_v28, %v731_v30  ;;  %v741_v33 = vmax.f32 %v739_v29, %v740_v31  ;;  %1795 = vmatprep.subr.bf16.mxu1 %v2110_v2 }
 0x40f   :  { %v733_v34 = vrot.slane %v732_v32, 4  ;;  %v742_v35 = vrot.slane %v741_v33, 4  ;;  %1784 = vmatmul.mubr.msk.bf16.vlgmr.msra.gmra.mxu1 %vm355_vm12, %v2276_v13 }
 0x410   :  { %1796 = vmatpush3.bf16.msra.mxu1 %v2254_v57  ;;  %1799 = vmatprep.mubr.msk.bf16.mxu1 %vm2113_vm0, %v2110_v2 }
 0x411   :  { %v734_v36 = vmax.f32 %v732_v32, %v733_v34  ;;  %v743_v37 = vmax.f32 %v741_v33, %v742_v35  ;;  %1797 = vmatprep.subr.bf16.mxu1 %v2110_v2 }
 0x413   :  { %v735_v38 = vrot.slane %v734_v36, 2  ;;  %v744_v42 = vrot.slane %v743_v37, 2 }
 0x414   :  { %1798 = vmatpush3.bf16.msra.mxu1 %v2290_v39 }
 0x415   :  { %v736_v44 = vmax.f32 %v734_v36, %v735_v38  ;;  %v745_v46 = vmax.f32 %v743_v37, %v744_v42  ;;  %1811 = vmatprep.subr.bf16.mxu1 %v2110_v2  ;;  %v2400_v38 = vld [vmem:[#allocation5 + $0x48] sm:$0xff]  }
 0x417   :  { %v737_v47 = vrot.slane %v736_v44, 1  ;;  %v746_v48 = vrot.slane %v745_v46, 1 }
 0x419   :  { %v738_v50 = vmax.f32 %v736_v44, %v737_v47  ;;  %v747_v51 = vmax.f32 %v745_v46, %v746_v48 }
 0x41b   :  { %v838_v57 = vpack.c.bf16 %v738_v50, %v738_v50  ;;  %v839_v53 = vpack.c.bf16 %v747_v51, %v747_v51 }
 0x41d   :  { %v842_v55 = vunpack.c.l.b16 %v838_v57  ;;  %v843_v56 = vunpack.c.l.b16 %v839_v53 }
 0x41f   :  { %v844_v61 = vsel %vm554_vm13, %v843_v56, %v842_v55 }
 0x420   :  { %v845_v8 = vpack.c.b16 %v844_v61, %v844_v61 }
 0x4cf   :  { %v719_v63 = vpop.f32.mrf.mxu1 }
 0x4d0   :  { %v725_v0 = vmul.f32 %v2295_v43, %v719_v63  ;;  %v748_v1 = vpack.c.bf16 %v719_v63, %v719_v63 }
 0x4d1   :  { %v1785_v3 = vpop.f32.mrf.mxu1 }
 0x4d2   :  { %v793_v39 = vpack.c.bf16 %v725_v0, %v725_v0  ;;  %1792 = vmatmul.mubr.msk.bf16.vlgmr.msra.gmra.mxu0 %vm199_vm9, %v748_v1 }
 0x4d3   :  { %v722_v4 = vpop.f32.mrf.mxu1  ;;  %1804 = vmatpush3.bf16.msra.mxu0 %v2303_v49  ;;  %1807 = vmatprep.mubr.msk.bf16.mxu0 %vm2113_vm0, %v2110_v2 }
 0x4d4   :  { %1800 = vmatmul.mubr.msk.bf16.vlgmr.msra.gmra.mxu1 %vm199_vm9, %v793_v39  ;;  %1805 = vmatprep.subr.bf16.mxu0 %v2110_v2 }
 0x4d5   :  { %v1786_v5 = vpop.f32.mrf.mxu1  ;;  %1812 = vmatpush3.bf16.msra.mxu1 %v2234_v40  ;;  %1815 = vmatprep.mubr.msk.bf16.mxu1 %vm2113_vm0, %v2110_v2  ;;  %v2380_v40 = vld [vmem:[#allocation5 + $0x38] sm:$0xff]  }
 0x4d6   :  { %1813 = vmatprep.subr.bf16.mxu1 %v2110_v2 }
 0x4d7   :  { %1806 = vmatpush3.bf16.msra.mxu0 %v2317_v54 }
 0x4d8   :  { %1819 = vmatprep.subr.bf16.mxu0 %v2110_v2 }
 0x4d9   :  { %1814 = vmatpush3.bf16.msra.mxu1 %v2241_v41 }
 0x4da   :  { %1808 = vmatmul.mubr.msk.bf16.vlgmr.msra.gmra.mxu0 %vm199_vm9, %v845_v8  ;;  %1825 = vmatprep.subr.bf16.mxu1 %v2110_v2  ;;  %v1939_v8 = vld [vmem:[#allocation5 + $0x30] sm:$0xff]  }
 0x4db   :  { %1821 = vmatprep.mubr.msk.bf16.mxu0 %vm2113_vm0, %v2110_v2 }
 0x4dc   :  { %1816 = vmatmul.mubr.msk.bf16.vlgmr.msra.gmra.mxu1 %vm199_vm9, %v684_v25 }
 0x4dd   :  { %1829 = vmatprep.mubr.msk.bf16.mxu1 %vm2113_vm0, %v2110_v2  ;;  %1826 = vmatpush3.bf16.msra.mxu1 %v2380_v40 }
 0x4de   :  { %1827 = vmatprep.subr.bf16.mxu1 %v2110_v2 }
 0x4e1   :  { %1828 = vmatpush3.bf16.msra.mxu1 %v1939_v8 }
 0x4e2   :  { %1841 = vmatprep.subr.bf16.mxu1 %v2110_v2 }
 0x592   :  { %v786_v49 = vpop.f32.mrf.mxu0 }
 0x593   :  { %v792_v41 = vadd.f32 %v786_v49, %v2338_v15  ;;  %v2410_v49 = vld [vmem:[#allocation5 + $0x40] sm:$0xff]  }
 0x594   :  { %v1793_v54 = vpop.f32.mrf.mxu0  ;;  %v831_v9 = vpop.f32.mrf.mxu1 }
 0x595   :  { %v837_v10 = vadd.f32 %v831_v9, %v792_v41  ;;  %v2415_v54 = vld [vmem:[#allocation5 + $0x58] sm:$0xff]  }
 0x596   :  { %v789_v11 = vpop.f32.mrf.mxu0  ;;  %v1801_v12 = vpop.f32.mrf.mxu1 }
 0x598   :  { %v1794_v14 = vpop.f32.mrf.mxu0  ;;  %v834_v16 = vpop.f32.mrf.mxu1 }
 0x599   :  { %v2420_v16 = vld [vmem:[#allocation5 + $0x50] sm:$0xff]  }
 0x59a   :  { %v1802_v17 = vpop.f32.mrf.mxu1  ;;  %v883_v18 = vpop.f32.mrf.mxu0 }
 0x59b   :  { %v2385_v19 = vadd.f32 %v883_v18, %v837_v10 }
 0x59c   :  { %v1809_v20 = vpop.f32.mrf.mxu0  ;;  %v927_v21 = vpop.f32.mrf.mxu1 }
 0x59d   :  { %v928_v22 = vadd.f32 %v2262_v60, %v927_v21 }
 0x59e   :  { %v886_v23 = vpop.f32.mrf.mxu0  ;;  %v1817_v24 = vpop.f32.mrf.mxu1 }
 0x59f   :  { %v934_v25 = vmax.f32 %v928_v22, 0.0 }
 0x5a0   :  { %v1810_v26 = vpop.f32.mrf.mxu0  ;;  %v930_v15 = vpop.f32.mrf.mxu1 }
 0x5a1   :  { %v931_v27 = vadd.f32 %v2262_v60, %v930_v15  ;;  %v978_v29 = vadd.f32 %v934_v25, %v2258_v58  ;;  %v980_v30 = vadd.f32 %v934_v25, %v2264_v62 }
 0x5a2   :  { %v1818_v28 = vpop.f32.mrf.mxu1 }
 0x5a3   :  { %v935_v31 = vmax.f32 %v931_v27, 0.0  ;;  %v982_v35 = vsel %vm199_vm9, %v978_v29, -inf  ;;  %v991_v36 = vsel %vm199_vm9, %v980_v30, -inf }
 0x5a5   :  { %v2391_v32 = vpack.c.bf16 %v935_v31, %v934_v25  ;;  %v979_v33 = vadd.f32 %v935_v31, %v2260_v59  ;;  %v981_v34 = vadd.f32 %v935_v31, %v2268_v6 }
 0x5a7   :  { %v983_v37 = vsel %vm199_vm9, %v979_v33, -inf  ;;  %v992_v60 = vsel %vm199_vm9, %v981_v34, -inf  ;;  %1820 = vmatpush3.bf16.msra.mxu0 %v2391_v32 }
 0x5a8   :  { %v984_v42 = vmax.f32 %v982_v35, %v983_v37  ;;  %v993_v44 = vmax.f32 %v991_v36, %v992_v60  ;;  %1833 = vmatprep.subr.bf16.mxu0 %v2110_v2 }
 0x5aa   :  { %v985_v46 = vrot.slane %v984_v42, 4  ;;  %v994_v47 = vrot.slane %v993_v44, 4  ;;  %1822 = vmatmul.mubr.msk.bf16.vlgmr.msra.gmra.mxu0 %vm355_vm12, %v2276_v13 }
 0x5ab   :  { %1834 = vmatpush3.bf16.msra.mxu0 %v2400_v38  ;;  %1837 = vmatprep.mubr.msk.bf16.mxu0 %vm2113_vm0, %v2110_v2 }
 0x5ac   :  { %v986_v48 = vmax.f32 %v984_v42, %v985_v46  ;;  %v995_v50 = vmax.f32 %v993_v44, %v994_v47  ;;  %1835 = vmatprep.subr.bf16.mxu0 %v2110_v2 }
 0x5ae   :  { %v987_v51 = vrot.slane %v986_v48, 2  ;;  %v996_v57 = vrot.slane %v995_v50, 2 }
 0x5af   :  { %1836 = vmatpush3.bf16.msra.mxu0 %v2410_v49 }
 0x5b0   :  { %v988_v53 = vmax.f32 %v986_v48, %v987_v51  ;;  %v997_v55 = vmax.f32 %v995_v50, %v996_v57  ;;  %1849 = vmatprep.subr.bf16.mxu0 %v2110_v2 }
 0x5b2   :  { %v989_v56 = vrot.slane %v988_v53, 1  ;;  %v998_v61 = vrot.slane %v997_v55, 1 }
 0x5b4   :  { %v990_v63 = vmax.f32 %v988_v53, %v989_v56  ;;  %v999_v0 = vmax.f32 %v997_v55, %v998_v61 }
 0x5b6   :  { %v1124_v1 = vpack.c.bf16 %v990_v63, %v990_v63  ;;  %v1125_v3 = vpack.c.bf16 %v999_v0, %v999_v0 }
 0x5b8   :  { %v1133_v39 = vunpack.c.l.b16 %v1124_v1  ;;  %v1134_v4 = vunpack.c.l.b16 %v1125_v3 }
 0x5ba   :  { %v1135_v5 = vsel %vm554_vm13, %v1134_v4, %v1133_v39 }
 0x5bb   :  { %v1136_v18 = vpack.c.b16 %v1135_v5, %v1135_v5 }
 0x66a   :  { %v971_v41 = vpop.f32.mrf.mxu0 }
 0x66b   :  { %v977_v9 = vmul.f32 %v2295_v43, %v971_v41  ;;  %v1000_v10 = vpack.c.bf16 %v971_v41, %v971_v41 }
 0x66c   :  { %v1823_v11 = vpop.f32.mrf.mxu0 }
 0x66d   :  { %v1062_v12 = vpack.c.bf16 %v977_v9, %v977_v9  ;;  %1830 = vmatmul.mubr.msk.bf16.vlgmr.msra.gmra.mxu1 %vm199_vm9, %v1000_v10 }
 0x66e   :  { %v974_v14 = vpop.f32.mrf.mxu0  ;;  %1842 = vmatpush3.bf16.msra.mxu1 %v2415_v54  ;;  %1845 = vmatprep.mubr.msk.bf16.mxu1 %vm2113_vm0, %v2110_v2 }
 0x66f   :  { %1838 = vmatmul.mubr.msk.bf16.vlgmr.msra.gmra.mxu0 %vm199_vm9, %v1062_v12  ;;  %1843 = vmatprep.subr.bf16.mxu1 %v2110_v2 }
 0x670   :  { %v1824_v17 = vpop.f32.mrf.mxu0  ;;  %1850 = vmatpush3.bf16.msra.mxu0 %v2300_v45  ;;  %1853 = vmatprep.mubr.msk.bf16.mxu0 %vm2113_vm0, %v2110_v2 }
 0x671   :  { %1851 = vmatprep.subr.bf16.mxu0 %v2110_v2  ;;  %v1944_v17 = vld [vmem:[%s2501_s7] sm:$0xff]  }
 0x672   :  { %1844 = vmatpush3.bf16.msra.mxu1 %v2420_v16 }
 0x673   :  { %1857 = vmatprep.subr.bf16.mxu1 %v2110_v2 }
 0x674   :  { %1852 = vmatpush3.bf16.msra.mxu0 %v2310_v52 }
 0x675   :  { %1846 = vmatmul.mubr.msk.bf16.vlgmr.msra.gmra.mxu1 %vm199_vm9, %v1136_v18  ;;  %1863 = vmatprep.subr.bf16.mxu0 %v2110_v2 }
 0x676   :  { %1859 = vmatprep.mubr.msk.bf16.mxu1 %vm2113_vm0, %v2110_v2 }
 0x677   :  { %1854 = vmatmul.mubr.msk.bf16.vlgmr.msra.gmra.mxu0 %vm199_vm9, %v2391_v32 }
 0x678   :  { %1864 = vmatpush3.bf16.msra.mxu0 %v2380_v40  ;;  %1867 = vmatprep.mubr.msk.bf16.mxu0 %vm2113_vm0, %v2110_v2 }
 0x679   :  { %1865 = vmatprep.subr.bf16.mxu0 %v2110_v2 }
 0x67c   :  { %1866 = vmatpush3.bf16.msra.mxu0 %v1939_v8 }
 0x67d   :  { %1879 = vmatprep.subr.bf16.mxu0 %v2110_v2 }
 0x72d   :  { %v1055_v45 = vpop.f32.mrf.mxu1 }
 0x72e   :  { %v1061_v52 = vadd.f32 %v1055_v45, %v2385_v19 }
 0x72f   :  { %v1831_v20 = vpop.f32.mrf.mxu1  ;;  %v1117_v21 = vpop.f32.mrf.mxu0 }
 0x730   :  { %v1123_v22 = vadd.f32 %v1117_v21, %v1061_v52 }
 0x731   :  { %v1058_v23 = vpop.f32.mrf.mxu1  ;;  %v1839_v24 = vpop.f32.mrf.mxu0 }
 0x733   :  { %v1832_v25 = vpop.f32.mrf.mxu1  ;;  %v1120_v26 = vpop.f32.mrf.mxu0 }
 0x735   :  { %v1840_v15 = vpop.f32.mrf.mxu0  ;;  %v1186_v40 = vpop.f32.mrf.mxu1 }
 0x736   :  { %v2445_v27 = vadd.f32 %v1186_v40, %v1123_v22  ;;  %v1655_v15 = vld [vmem:[#allocation7] ss:$0 sm:$0xff] }
 0x737   :  { %v1847_v28 = vpop.f32.mrf.mxu1  ;;  %v1230_v29 = vpop.f32.mrf.mxu0 }
 0x738   :  { %v1231_v30 = vadd.f32 %v2335_v7, %v1230_v29 }
 0x739   :  { %v1189_v31 = vpop.f32.mrf.mxu1  ;;  %v1855_v32 = vpop.f32.mrf.mxu0 }
 0x73a   :  { %v1237_v33 = vmax.f32 %v1231_v30, 0.0 }
 0x73b   :  { %v1848_v34 = vpop.f32.mrf.mxu1  ;;  %v1233_v19 = vpop.f32.mrf.mxu0 }
 0x73c   :  { %v1234_v35 = vadd.f32 %v2335_v7, %v1233_v19  ;;  %v1281_v37 = vadd.f32 %v1237_v33, %v2258_v58  ;;  %v1283_v60 = vadd.f32 %v1237_v33, %v2264_v62 }
 0x73d   :  { %v1856_v36 = vpop.f32.mrf.mxu0 }
 0x73e   :  { %v1238_v42 = vmax.f32 %v1234_v35, 0.0  ;;  %v1285_v48 = vsel %vm199_vm9, %v1281_v37, -inf  ;;  %v1294_v50 = vsel %vm199_vm9, %v1283_v60, -inf }
 0x740   :  { %v1239_v44 = vpack.c.bf16 %v1238_v42, %v1237_v33  ;;  %v1282_v46 = vadd.f32 %v1238_v42, %v2260_v59  ;;  %v1284_v47 = vadd.f32 %v1238_v42, %v2268_v6  ;;  %v1945_v33 = vld [vmem:[#allocation10] sm:$0xff]  }
 0x742   :  { %v1286_v51 = vsel %vm199_vm9, %v1282_v46, -inf  ;;  %v1295_v57 = vsel %vm199_vm9, %v1284_v47, -inf  ;;  %1858 = vmatpush3.bf16.msra.mxu1 %v1239_v44  ;;  %v1660_v44 = vld [vmem:[#allocation11] ss:$0 sm:$0xff] }
 0x743   :  { %v1287_v7 = vmax.f32 %v1285_v48, %v1286_v51  ;;  %v1296_v53 = vmax.f32 %v1294_v50, %v1295_v57  ;;  %1871 = vmatprep.subr.bf16.mxu1 %v2110_v2 }
 0x745   :  { %v1288_v58 = vrot.slane %v1287_v7, 4  ;;  %v1297_v62 = vrot.slane %v1296_v53, 4  ;;  %1860 = vmatmul.mubr.msk.bf16.vlgmr.msra.gmra.mxu1 %vm355_vm12, %v2276_v13 }
 0x746   :  { %1872 = vmatpush3.bf16.msra.mxu1 %v2400_v38  ;;  %1875 = vmatprep.mubr.msk.bf16.mxu1 %vm2113_vm0, %v2110_v2 }
 0x747   :  { %v1289_v59 = vmax.f32 %v1287_v7, %v1288_v58  ;;  %v1298_v6 = vmax.f32 %v1296_v53, %v1297_v62  ;;  %1873 = vmatprep.subr.bf16.mxu1 %v2110_v2 }
 0x749   :  { %v1290_v55 = vrot.slane %v1289_v59, 2  ;;  %v1299_v56 = vrot.slane %v1298_v6, 2 }
 0x74a   :  { %1874 = vmatpush3.bf16.msra.mxu1 %v2410_v49 }
 0x74b   :  { %v1291_v61 = vmax.f32 %v1289_v59, %v1290_v55  ;;  %v1300_v63 = vmax.f32 %v1298_v6, %v1299_v56  ;;  %1887 = vmatprep.subr.bf16.mxu1 %v2110_v2 }
 0x74d   :  { %v1292_v0 = vrot.slane %v1291_v61, 1  ;;  %v1301_v1 = vrot.slane %v1300_v63, 1 }
 0x74f   :  { %v1293_v13 = vmax.f32 %v1291_v61, %v1292_v0  ;;  %v1302_v3 = vmax.f32 %v1300_v63, %v1301_v1 }
 0x751   :  { %v1393_v38 = vpack.c.bf16 %v1293_v13, %v1293_v13  ;;  %v1394_v39 = vpack.c.bf16 %v1302_v3, %v1302_v3 }
 0x753   :  { %v1397_v4 = vunpack.c.l.b16 %v1393_v38  ;;  %v1398_v5 = vunpack.c.l.b16 %v1394_v39 }
 0x755   :  { %v1399_v8 = vsel %vm554_vm13, %v1398_v5, %v1397_v4 }
 0x805   :  { %v1274_v41 = vpop.f32.mrf.mxu1 }
 0x806   :  { %v1280_v9 = vmul.f32 %v2295_v43, %v1274_v41  ;;  %v1303_v10 = vpack.c.bf16 %v1274_v41, %v1274_v41  ;;  %v1400_v43 = vpack.c.b16 %v1399_v8, %v1399_v8 }
 0x807   :  { %v1861_v11 = vpop.f32.mrf.mxu1 }
 0x808   :  { %v1348_v49 = vpack.c.bf16 %v1280_v9, %v1280_v9  ;;  %1868 = vmatmul.mubr.msk.bf16.vlgmr.msra.gmra.mxu0 %vm199_vm9, %v1303_v10 }
 0x809   :  { %v1277_v12 = vpop.f32.mrf.mxu1  ;;  %1880 = vmatpush3.bf16.msra.mxu0 %v2415_v54  ;;  %1883 = vmatprep.mubr.msk.bf16.mxu0 %vm2113_vm0, %v2110_v2  ;;  %v1943_v54 = vld [vmem:[%s2501_s7 + $0x8] sm:$0xff]   ;;  %s2115_s7 = smov [#allocation13]  }
 0x80a   :  { %1876 = vmatmul.mubr.msk.bf16.vlgmr.msra.gmra.mxu1 %vm199_vm9, %v1348_v49  ;;  %1881 = vmatprep.subr.bf16.mxu0 %v2110_v2  ;;  %s1588_s27 = sshll.u32 %s2115_s7, 4  ;;  %s1589_s27 = int_to_ptr.vmem [resolvable:$true] %s1588_s27 }
 0x80b   :  { %v1862_v14 = vpop.f32.mrf.mxu1  ;;  %1891 = vmatprep.mubr.msk.bf16.mxu1 %vm2113_vm0, %v2110_v2  ;;  %1888 = vmatpush3.bf16.msra.mxu1 %v1943_v54  ;;  %s2068_s28 = scalar_lea.vmem %s1589_s27, 32  ;;  %p2073_p3 = scmp.lt.s32.totalorder %s1589_s27, %s1589_s27 }
 0x80c   :  { %1889 = vmatprep.subr.bf16.mxu1 %v2110_v2  ;;  %p2069_p2 = scmp.ne.s32.totalorder %s1589_s27, %s2068_s28  ;;  %p2074_p4 = scmp.lt.s32.totalorder %s2068_s28, %s2068_s28 }
 0x80d   :  { %1882 = vmatpush3.bf16.msra.mxu0 %v2420_v16 }
 0x80e   :  { %1895 = vmatprep.subr.bf16.mxu0 %v2110_v2  ;;  %p2075_p5 = por %p2074_p4, %p2073_p3 }
 0x80f   :  { %1890 = vmatpush3.bf16.msra.mxu1 %v1944_v17 }
 0x810   :  { %1884 = vmatmul.mubr.msk.bf16.vlgmr.msra.gmra.mxu0 %vm199_vm9, %v1400_v43  ;;  %p2076_p6 = pnand %p2075_p5, %p2069_p2 }
 0x811   :  { %1897 = vmatprep.mubr.msk.bf16.mxu0 %vm2113_vm0, %v2110_v2  ;;  %1896 = vmatpush3.bf16.msra.mxu0 %v1945_v33 }
 0x8c8   :  { %v1341_v16 = vpop.f32.mrf.mxu0 }
 0x8c9   :  { %v1347_v52 = vadd.f32 %v1341_v16, %v2445_v27  ;;  %v1656_v27 = vld [vmem:[#allocation8] ss:$0 sm:$0xff] }
 0x8ca   :  { %v1869_v18 = vpop.f32.mrf.mxu0  ;;  %v1386_v45 = vpop.f32.mrf.mxu1 }
 0x8cb   :  { %v1392_v24 = vadd.f32 %v1386_v45, %v1347_v52 }
 0x8cc   :  { %v1344_v20 = vpop.f32.mrf.mxu0  ;;  %v1877_v21 = vpop.f32.mrf.mxu1 }
 0x8ce   :  { %v1870_v22 = vpop.f32.mrf.mxu0  ;;  %v1389_v23 = vpop.f32.mrf.mxu1 }
 0x8d0   :  { %v1878_v25 = vpop.f32.mrf.mxu1  ;;  %v1438_v26 = vpop.f32.mrf.mxu0 }
 0x8d1   :  { %v1444_v40 = vadd.f32 %v1438_v26, %v1392_v24 }
 0x8d2   :  { %v1885_v2 = vpop.f32.mrf.mxu0 }
 0x8d3   :  { %v1452_v28 = vadd.f32 %v1655_v15, %v1444_v40 }
 0x8d4   :  { %v1441_v29 = vpop.f32.mrf.mxu0 }
 0x8d5   :  { %v1453_v30 = vmax.f32 %v1452_v28, 0.0 }
 0x8d6   :  { %v1886_v31 = vpop.f32.mrf.mxu0 }
 0x8d7   :  { %v1454_v32 = vpack.c.bf16 %v1453_v30, %v1453_v30 }
 0x8d9   :  { %1892 = vmatmul.mubr.msk.bf16.vlgmr.msra.gmra.mxu1 %vm199_vm9, %v1454_v32 }
 0x999   :  { %v1515_v34 = vpop.f32.mrf.mxu1 }
 0x99a   :  { %v1516_v19 = vadd.f32 %v1656_v27, %v1515_v34 }
 0x99b   :  { %v1893_v35 = vpop.f32.mrf.mxu1 }
 0x99c   :  { %v1521_v36 = vmax.f32 %v1516_v19, 0.0 }
 0x99d   :  { %v1518_v37 = vpop.f32.mrf.mxu1 }
 0x99e   :  { %v1522_v60 = vpack.c.bf16 %v1521_v36, %v1521_v36 }
 0x99f   :  { %v1894_v42 = vpop.f32.mrf.mxu1 }
 0x9a0   :  { %1898 = vmatmul.mubr.msk.bf16.vlgmr.msra.gmra.mxu0 %vm355_vm12, %v1522_v60 }
 0xa60   :  { %v1575_v46 = vpop.f32.mrf.mxu0 }
 0xa61   :  { %v1576_v47 = vadd.f32 %v1660_v44, %v1575_v46 }
 0xa62   :  { %v1899_v48 = vpop.f32.mrf.mxu0 }
 0xa63   :  { %1581 = vst [vmem:[#allocation13] sm:$0x3] %v1576_v47 }
 0xa64   :  { %v1578_v50 = vpop.f32.mrf.mxu0 }
 0xa65   :  { %2079 = shalt.err (!%p2076_p6)
}
 0xa66   :  { %1591 = dma.vmem_to_hbm [thread:$0]  %s1589_s27, 32, %s2505_s11, [#allocation4]   ;;  %v1900_v51 = vpop.f32.mrf.mxu0 }
 0xa67   :  { %2096 = dma.done.wait [#allocation4], 32  }
 0xa68   :  { %2097 = vsyncadd [#allocation4], 4294967264 }
 0xa69   :  { %1595 = vsyncpa [#allocation3], 1 }
 0xa6a   :  { %1596 = vsyncpa [#allocation6], 1 }
 0xa6b   :  { %1597 = vsyncpa [#allocation9], 1 }
 0xa6c   :  { %1598 = vsyncpa [#allocation12], 1 }
 0xa6d   :  { %1599 = vsyncpa [#allocation4], 1 }

</bundles_post_ra>
